<compile_context>
chip_gen: v7x
topology: tpu7x:2x2x1
jax: 0.10.0
libtpu: 0.0.40
codegen_flags: <defaults>
</compile_context>

<pallas_src>
import jax
import jax.numpy as jnp
import numpy as np
from jax import lax
from jax.experimental import pallas as pl
from jax.experimental.pallas import tpu as pltpu

HIDDEN = 1000          # module's hardcoded 1000-wide branch/trunk output
LANE = 128
_GROUP_PARAMS = 9      # wfold, (w0,b0) .. (w3,b3) per trunk group


def _round_up(x, m):
    return ((x + m - 1) // m) * m


def _pad_to(x, shape):
    return jnp.pad(x, [(0, s - d) for d, s in zip(x.shape, shape)])


def _is_v5e():
    try:
        kind = jax.devices()[0].device_kind.lower()
        return ("v5e" in kind) or ("v5 lite" in kind) or ("v5lite" in kind)
    except Exception:
        return False


# ----------------------------------------------------------------------------
# Kernel
# ----------------------------------------------------------------------------
def _first_trunk_layer(t, w0, b0):
    """First trunk Linear.  For tiny K (2 coords for 2D Helmholtz) use VPU
    broadcast FMAs instead of a degenerate K=2 MXU matmul."""
    ft = t.shape[1]
    if ft <= 8:
        z = t[:, 0:1] * w0[0:1, :]
        for i in range(1, ft):
            z = z + t[:, i:i + 1] * w0[i:i + 1, :]
        return z + b0
    return jnp.dot(t, w0, preferred_element_type=jnp.float32) + b0


def _possion_onet_kernel(cb_ref, t_ref, bfold_ref, *rest):
    """Fused forward for one batch tile.

    refs layout:
      cb_ref    : concatenated branch tile (TILE_B, F1+F2)
      t_ref     : trunk tile               (TILE_B, FT)
      bfold_ref : summed folded b4 column  (F1+F2, 1)
      rest[:-1] : trunk groups, 9 params each:
                  wfold (F, Cp_g), w0 (FT, Cp_g), b0 (1, Cp_g),
                  w1,b1, w2,b2, w3,b3                (all zero-padded)
      rest[-1]  : out tile (TILE_B, 1)
    """
    out_ref = rest[-1]
    wrefs = rest[:-1]
    n_groups = len(wrefs) // _GROUP_PARAMS

    cb = cb_ref[...]
    t = t_ref[...]

    # Branch-side term coming from the folded layer-4 bias of both nets.
    acc = jnp.dot(cb, bfold_ref[...], preferred_element_type=jnp.float32)

    for g in range(n_groups):
        (wfold_ref, w0_ref, b0_ref, w1_ref, b1_ref,
         w2_ref, b2_ref, w3_ref, b3_ref) = wrefs[g * _GROUP_PARAMS:
                                                 (g + 1) * _GROUP_PARAMS]

        # trunk: 4x (Linear + Tanh); layer 4 is folded away.
        h = jnp.tanh(_first_trunk_layer(t, w0_ref[...], b0_ref[...]))
        for w_ref, b_ref in ((w1_ref, b1_ref), (w2_ref, b2_ref),
                             (w3_ref, b3_ref)):
            h = jnp.tanh(
                jnp.dot(h, w_ref[...], preferred_element_type=jnp.float32)
                + b_ref[...])

        # folded branch projection (K = F1+F2, N = Cp_g)
        bf = jnp.dot(cb, wfold_ref[...], preferred_element_type=jnp.float32)
        prod = bf * h                                    # (TILE_B, Cp_g)
        # cheap K<=256 reduce on the MXU; padded lanes are exactly zero.
        ones_col = jnp.ones((prod.shape[1], 1), jnp.float32)
        acc = acc + jnp.dot(prod, ones_col,
                            preferred_element_type=jnp.float32)

    out_ref[...] = acc.astype(out_ref.dtype)


# ----------------------------------------------------------------------------
# Host-side parameter prep (fold W4/b4/lw into the branch, pad, block-diag)
# ----------------------------------------------------------------------------
def prepare_kernel_params(params1, params2, fuse_trunks):
    """Module-style params -> (bfold_sum, trunk groups) for the kernel.

    params = [wb (F,1000), w0,b0, w1,b1, w2,b2, w3,b3, w4,b4, lw (1000,)]
    with weights stored as (in, out) and 1-D biases.
    """
    HP = lax.Precision.HIGHEST

    def fold(p):
        wb, w4, b4, lw = p[0], p[9], p[10], p[11]
        wbs = (wb * lw[None, :]).astype(jnp.float32)             # (F_i, 1000)
        wfold = jnp.dot(wbs, w4.T.astype(jnp.float32), precision=HP)  # (F_i, C)
        bfold = jnp.dot(wbs, b4.astype(jnp.float32), precision=HP)    # (F_i,)
        return wfold, bfold

    def trunk_layers(p, cp):
        out = [_pad_to(p[1].astype(jnp.float32), (p[1].shape[0], cp)),
               _pad_to(p[2].reshape(1, -1).astype(jnp.float32), (1, cp))]
        for i in range(1, 4):
            out += [_pad_to(p[1 + 2 * i].astype(jnp.float32), (cp, cp)),
                    _pad_to(p[2 + 2 * i].reshape(1, -1).astype(jnp.float32),
                            (1, cp))]
        return out

    wf1, bf1 = fold(params1)
    wf2, bf2 = fold(params2)
    F1, C1 = wf1.shape
    F2, C2 = wf2.shape
    Cp1, Cp2 = _round_up(C1, LANE), _round_up(C2, LANE)
    F = F1 + F2

    bfold_sum = jnp.concatenate([bf1, bf2]).reshape(F, 1).astype(jnp.float32)
    t1 = trunk_layers(params1, Cp1)
    t2 = trunk_layers(params2, Cp2)

    if fuse_trunks:
        # One block-diagonal "net": layers become (Cp1+Cp2) x (Cp1+Cp2).
        Cp = Cp1 + Cp2
        wfold = jnp.zeros((F, Cp), jnp.float32)
        wfold = wfold.at[:F1, :C1].set(wf1)
        wfold = wfold.at[F1:, Cp1:Cp1 + C2].set(wf2)
        group = [wfold,
                 jnp.concatenate([t1[0], t2[0]], axis=1),
                 jnp.concatenate([t1[1], t2[1]], axis=1)]
        for i in range(1, 4):
            w = jnp.zeros((Cp, Cp), jnp.float32)
            w = w.at[:Cp1, :Cp1].set(t1[2 * i])
            w = w.at[Cp1:, Cp1:].set(t2[2 * i])
            group += [w,
                      jnp.concatenate([t1[2 * i + 1], t2[2 * i + 1]], axis=1)]
        groups = [group]
    else:
        # Two per-net groups; wfold rows for the other branch are zero so the
        # concatenated branch input can be used for both.
        wfold1 = jnp.zeros((F, Cp1), jnp.float32).at[:F1, :C1].set(wf1)
        wfold2 = jnp.zeros((F, Cp2), jnp.float32).at[F1:, :C2].set(wf2)
        groups = [[wfold1] + t1, [wfold2] + t2]

    return bfold_sum, groups


# ----------------------------------------------------------------------------
# Wrapper
# ----------------------------------------------------------------------------
def possion_onet_forward(branch1, branch2, trunk, params1, params2,
                         *, tile_b=256, fuse_trunks=None):
    """Batch-gridded fused forward.  params are module-style (see init)."""
    if fuse_trunks is None:
        # block-diag 256x256 trunk fusion helps v6e/v7x (2x256x256 MXU);
        # keep per-net 128x128 matmuls on v5e (4x128x128 MXU).
        fuse_trunks = not _is_v5e()

    B = branch1.shape[0]
    tile_b = _round_up(max(8, min(tile_b, _round_up(B, 8))), 8)
    b_pad = _round_up(B, tile_b)

    cat_b = jnp.concatenate(
        [branch1.astype(jnp.float32), branch2.astype(jnp.float32)], axis=1)

    def pad_rows(x):
        return jnp.pad(x, ((0, b_pad - x.shape[0]), (0, 0)))

    cat_b = pad_rows(cat_b)
    tp = pad_rows(trunk.astype(jnp.float32))

    bfold_sum, groups = prepare_kernel_params(params1, params2, fuse_trunks)
    weights = [w for g in groups for w in g]
    flat_inputs = [cat_b, tp, bfold_sum] + weights

    def tiled_spec(arr):
        return pl.BlockSpec((tile_b, arr.shape[1]), lambda i: (i, 0))

    def resident_spec(arr):
        # Constant index_map -> fetched once, stays VMEM-resident across grid.
        return pl.BlockSpec(arr.shape, lambda i: (0, 0))

    in_specs = ([tiled_spec(cat_b), tiled_spec(tp)]
                + [resident_spec(x) for x in [bfold_sum] + weights])
    out_spec = pl.BlockSpec((tile_b, 1), lambda i: (i, 0))

    out = pl.pallas_call(
        _possion_onet_kernel,
        out_shape=jax.ShapeDtypeStruct((b_pad, 1), jnp.float32),
        grid=(b_pad // tile_b,),
        in_specs=in_specs,
        out_specs=out_spec,
        compiler_params=pltpu.CompilerParams(
            dimension_semantics=("parallel",),
            vmem_limit_bytes=32 * 1024 * 1024),
    )(*flat_inputs)
    return out[:B]


# ----------------------------------------------------------------------------
# Synthetic params + pure-JAX reference (mirrors the PyTorch forward)
# ----------------------------------------------------------------------------
def init_net_params(key, branch_features, trunk_features, common_features,
                    scale=0.1):
    """[wb, w0,b0, ..., w4,b4, lw]; weights (in, out), biases 1-D."""
    keys = jax.random.split(key, 12)
    params = [scale * jax.random.normal(
        keys[0], (branch_features, HIDDEN), jnp.float32)]
    dims = [trunk_features] + [common_features] * 4 + [HIDDEN]
    for i in range(5):
        params.append(scale * jax.random.normal(
            keys[1 + 2 * i], (dims[i], dims[i + 1]), jnp.float32))
        params.append(scale * jax.random.normal(
            keys[2 + 2 * i], (dims[i + 1],), jnp.float32))
    params.append(jax.random.normal(keys[11], (HIDDEN,), jnp.float32))
    return params


def possion_onet_reference(branch1, branch2, trunk, params1, params2):
    def net(branch_in, p):
        branch_out = branch_in @ p[0]
        h = trunk
        for i in range(5):
            h = h @ p[1 + 2 * i] + p[2 + 2 * i]
            if i < 4:
                h = jnp.tanh(h)
        return jnp.sum(branch_out * h * p[11], axis=1, keepdims=True)
    return net(branch1, params1) + net(branch2, params2)


if __name__ == "__main__":
    # Small shapes consistent with the module's forward (2D Helmholtz:
    # trunk input = (x, y) coordinates; batch = query points).
    B = 512
    branch1_features = 32
    branch2_features = 16
    trunk_features = 2
    common_features1 = 32
    common_features2 = 48

    root = jax.random.PRNGKey(0)
    k_b1, k_b2, k_t, k_p1, k_p2 = jax.random.split(root, 5)

    branch1_input = jax.random.normal(k_b1, (B, branch1_features), jnp.float32)
    branch2_input = jax.random.normal(k_b2, (B, branch2_features), jnp.float32)
    trunk_input = jax.random.normal(k_t, (B, trunk_features), jnp.float32)

    params1 = init_net_params(k_p1, branch1_features, trunk_features,
                              common_features1)
    params2 = init_net_params(k_p2, branch2_features, trunk_features,
                              common_features2)

    # tile_b=128 keeps >=2 grid blocks per v7x TensorCore at this small batch;
    # for large query batches raise tile_b (default 256, sweep 256-512).
    out = possion_onet_forward(branch1_input, branch2_input, trunk_input,
                               params1, params2, tile_b=128)
    out = jax.block_until_ready(out)

    with jax.default_matmul_precision("highest"):
        ref = possion_onet_reference(branch1_input, branch2_input, trunk_input,
                                     params1, params2)
    ref = jax.block_until_ready(ref)

    assert out.shape == (B, 1), out.shape
    np.testing.assert_allclose(np.asarray(out), np.asarray(ref),
                               rtol=5e-4, atol=5e-4)
    print("KERNEL_OK")
</pallas_src>

<mosaic_0001>
module attributes {stable_mosaic.version = 11 : i64} {
  func.func @_possion_onet_kernel(%arg0: i32, %arg1: memref<128x48xf32, #tpu.memory_space<vmem>>, %arg2: memref<128x2xf32, #tpu.memory_space<vmem>>, %arg3: memref<48x1xf32, #tpu.memory_space<vmem>>, %arg4: memref<48x256xf32, #tpu.memory_space<vmem>>, %arg5: memref<2x256xf32, #tpu.memory_space<vmem>>, %arg6: memref<1x256xf32, #tpu.memory_space<vmem>>, %arg7: memref<256x256xf32, #tpu.memory_space<vmem>>, %arg8: memref<1x256xf32, #tpu.memory_space<vmem>>, %arg9: memref<256x256xf32, #tpu.memory_space<vmem>>, %arg10: memref<1x256xf32, #tpu.memory_space<vmem>>, %arg11: memref<256x256xf32, #tpu.memory_space<vmem>>, %arg12: memref<1x256xf32, #tpu.memory_space<vmem>>, %arg13: memref<128x1xf32, #tpu.memory_space<vmem>>) attributes {dimension_semantics = [#tpu.dimension_semantics<parallel>], iteration_bounds = array<i64: 4>, scalar_prefetch = 0 : i64, scratch_operands = 0 : i64, tpu.core_type = #tpu.core_type<tc>, window_params = [{transform_indices = @transform_0, window_bounds = array<i64: 128, 48>}, {transform_indices = @transform_1, window_bounds = array<i64: 128, 2>}, {pipeline_mode = #tpu.pipeline_mode<synchronous>, transform_indices = @transform_2, window_bounds = array<i64: 48, 1>}, {pipeline_mode = #tpu.pipeline_mode<synchronous>, transform_indices = @transform_3, window_bounds = array<i64: 48, 256>}, {pipeline_mode = #tpu.pipeline_mode<synchronous>, transform_indices = @transform_4, window_bounds = array<i64: 2, 256>}, {pipeline_mode = #tpu.pipeline_mode<synchronous>, transform_indices = @transform_5, window_bounds = array<i64: 1, 256>}, {pipeline_mode = #tpu.pipeline_mode<synchronous>, transform_indices = @transform_6, window_bounds = array<i64: 256, 256>}, {pipeline_mode = #tpu.pipeline_mode<synchronous>, transform_indices = @transform_7, window_bounds = array<i64: 1, 256>}, {pipeline_mode = #tpu.pipeline_mode<synchronous>, transform_indices = @transform_8, window_bounds = array<i64: 256, 256>}, {pipeline_mode = #tpu.pipeline_mode<synchronous>, transform_indices = @transform_9, window_bounds = array<i64: 1, 256>}, {pipeline_mode = #tpu.pipeline_mode<synchronous>, transform_indices = @transform_10, window_bounds = array<i64: 256, 256>}, {pipeline_mode = #tpu.pipeline_mode<synchronous>, transform_indices = @transform_11, window_bounds = array<i64: 1, 256>}, {transform_indices = @transform_12, window_bounds = array<i64: 128, 1>}]} {
    %c0 = arith.constant 0 : index
    %c0_0 = arith.constant 0 : index
    %0 = vector.load %arg1[%c0, %c0_0] : memref<128x48xf32, #tpu.memory_space<vmem>>, vector<128x48xf32>
    %c0_1 = arith.constant 0 : index
    %c0_2 = arith.constant 0 : index
    %1 = vector.load %arg2[%c0_1, %c0_2] : memref<128x2xf32, #tpu.memory_space<vmem>>, vector<128x2xf32>
    %c0_3 = arith.constant 0 : index
    %c0_4 = arith.constant 0 : index
    %2 = vector.load %arg3[%c0_3, %c0_4] : memref<48x1xf32, #tpu.memory_space<vmem>>, vector<48x1xf32>
    %cst = arith.constant dense<0.000000e+00> : vector<128x1xf32>
    %3 = tpu.matmul %0, %2, %cst {dimension_numbers = #tpu.dot_dimension_numbers<[1], [0], [0], [1], [0, 0, 1, 1], [], []>} : vector<128x48xf32>, vector<48x1xf32>, vector<128x1xf32> -> vector<128x1xf32>
    %c0_5 = arith.constant 0 : index
    %c0_6 = arith.constant 0 : index
    %4 = vector.load %arg5[%c0_5, %c0_6] : memref<2x256xf32, #tpu.memory_space<vmem>>, vector<2x256xf32>
    %c0_7 = arith.constant 0 : index
    %c0_8 = arith.constant 0 : index
    %5 = vector.load %arg6[%c0_7, %c0_8] : memref<1x256xf32, #tpu.memory_space<vmem>>, vector<1x256xf32>
    %6 = vector.extract_strided_slice %1 {offsets = [0, 0], sizes = [128, 1], strides = [1, 1]} : vector<128x2xf32> to vector<128x1xf32>
    %7 = vector.extract_strided_slice %4 {offsets = [0, 0], sizes = [1, 256], strides = [1, 1]} : vector<2x256xf32> to vector<1x256xf32>
    %8 = vector.broadcast %6 : vector<128x1xf32> to vector<128x256xf32>
    %9 = vector.broadcast %7 : vector<1x256xf32> to vector<128x256xf32>
    %10 = arith.mulf %8, %9 : vector<128x256xf32>
    %11 = vector.extract_strided_slice %1 {offsets = [0, 1], sizes = [128, 1], strides = [1, 1]} : vector<128x2xf32> to vector<128x1xf32>
    %12 = vector.extract_strided_slice %4 {offsets = [1, 0], sizes = [1, 256], strides = [1, 1]} : vector<2x256xf32> to vector<1x256xf32>
    %13 = vector.broadcast %11 : vector<128x1xf32> to vector<128x256xf32>
    %14 = vector.broadcast %12 : vector<1x256xf32> to vector<128x256xf32>
    %15 = arith.mulf %13, %14 : vector<128x256xf32>
    %16 = arith.addf %10, %15 : vector<128x256xf32>
    %17 = vector.broadcast %5 : vector<1x256xf32> to vector<128x256xf32>
    %18 = arith.addf %16, %17 : vector<128x256xf32>
    %19 = math.tanh %18 : vector<128x256xf32>
    %c0_9 = arith.constant 0 : index
    %c0_10 = arith.constant 0 : index
    %20 = vector.load %arg7[%c0_9, %c0_10] : memref<256x256xf32, #tpu.memory_space<vmem>>, vector<256x256xf32>
    %cst_11 = arith.constant dense<0.000000e+00> : vector<128x256xf32>
    %21 = tpu.matmul %19, %20, %cst_11 {dimension_numbers = #tpu.dot_dimension_numbers<[1], [0], [0], [1], [0, 0, 1, 1], [], []>} : vector<128x256xf32>, vector<256x256xf32>, vector<128x256xf32> -> vector<128x256xf32>
    %c0_12 = arith.constant 0 : index
    %c0_13 = arith.constant 0 : index
    %22 = vector.load %arg8[%c0_12, %c0_13] : memref<1x256xf32, #tpu.memory_space<vmem>>, vector<1x256xf32>
    %23 = vector.broadcast %22 : vector<1x256xf32> to vector<128x256xf32>
    %24 = arith.addf %21, %23 : vector<128x256xf32>
    %25 = math.tanh %24 : vector<128x256xf32>
    %c0_14 = arith.constant 0 : index
    %c0_15 = arith.constant 0 : index
    %26 = vector.load %arg9[%c0_14, %c0_15] : memref<256x256xf32, #tpu.memory_space<vmem>>, vector<256x256xf32>
    %cst_16 = arith.constant dense<0.000000e+00> : vector<128x256xf32>
    %27 = tpu.matmul %25, %26, %cst_16 {dimension_numbers = #tpu.dot_dimension_numbers<[1], [0], [0], [1], [0, 0, 1, 1], [], []>} : vector<128x256xf32>, vector<256x256xf32>, vector<128x256xf32> -> vector<128x256xf32>
    %c0_17 = arith.constant 0 : index
    %c0_18 = arith.constant 0 : index
    %28 = vector.load %arg10[%c0_17, %c0_18] : memref<1x256xf32, #tpu.memory_space<vmem>>, vector<1x256xf32>
    %29 = vector.broadcast %28 : vector<1x256xf32> to vector<128x256xf32>
    %30 = arith.addf %27, %29 : vector<128x256xf32>
    %31 = math.tanh %30 : vector<128x256xf32>
    %c0_19 = arith.constant 0 : index
    %c0_20 = arith.constant 0 : index
    %32 = vector.load %arg11[%c0_19, %c0_20] : memref<256x256xf32, #tpu.memory_space<vmem>>, vector<256x256xf32>
    %cst_21 = arith.constant dense<0.000000e+00> : vector<128x256xf32>
    %33 = tpu.matmul %31, %32, %cst_21 {dimension_numbers = #tpu.dot_dimension_numbers<[1], [0], [0], [1], [0, 0, 1, 1], [], []>} : vector<128x256xf32>, vector<256x256xf32>, vector<128x256xf32> -> vector<128x256xf32>
    %c0_22 = arith.constant 0 : index
    %c0_23 = arith.constant 0 : index
    %34 = vector.load %arg12[%c0_22, %c0_23] : memref<1x256xf32, #tpu.memory_space<vmem>>, vector<1x256xf32>
    %35 = vector.broadcast %34 : vector<1x256xf32> to vector<128x256xf32>
    %36 = arith.addf %33, %35 : vector<128x256xf32>
    %37 = math.tanh %36 : vector<128x256xf32>
    %c0_24 = arith.constant 0 : index
    %c0_25 = arith.constant 0 : index
    %38 = vector.load %arg4[%c0_24, %c0_25] : memref<48x256xf32, #tpu.memory_space<vmem>>, vector<48x256xf32>
    %cst_26 = arith.constant dense<0.000000e+00> : vector<128x256xf32>
    %39 = tpu.matmul %0, %38, %cst_26 {dimension_numbers = #tpu.dot_dimension_numbers<[1], [0], [0], [1], [0, 0, 1, 1], [], []>} : vector<128x48xf32>, vector<48x256xf32>, vector<128x256xf32> -> vector<128x256xf32>
    %40 = arith.mulf %39, %37 : vector<128x256xf32>
    %cst_27 = arith.constant 1.000000e+00 : f32
    %41 = vector.broadcast %cst_27 : f32 to vector<256x1xf32>
    %cst_28 = arith.constant dense<0.000000e+00> : vector<128x1xf32>
    %42 = tpu.matmul %40, %41, %cst_28 {dimension_numbers = #tpu.dot_dimension_numbers<[1], [0], [0], [1], [0, 0, 1, 1], [], []>} : vector<128x256xf32>, vector<256x1xf32>, vector<128x1xf32> -> vector<128x1xf32>
    %43 = arith.addf %3, %42 : vector<128x1xf32>
    %c0_29 = arith.constant 0 : index
    %c0_30 = arith.constant 0 : index
    %44 = vector.load %arg13[%c0_29, %c0_30] : memref<128x1xf32, #tpu.memory_space<vmem>>, vector<128x1xf32>
    tpu.vector_store %arg13[%c0_29, %c0_30], %43 {strides = array<i32>} : memref<128x1xf32, #tpu.memory_space<vmem>>, vector<128x1xf32>,
    return
  }
  func.func @transform_0(%arg0: i32) -> (i32, i32) {
    %c0_i32 = arith.constant 0 : i32
    %c0_i32_0 = arith.constant 0 : i32
    return %arg0, %c0_i32 : i32, i32
  }
  func.func @transform_1(%arg0: i32) -> (i32, i32) {
    %c0_i32 = arith.constant 0 : i32
    %c0_i32_0 = arith.constant 0 : i32
    return %arg0, %c0_i32 : i32, i32
  }
  func.func @transform_2(%arg0: i32) -> (i32, i32) {
    %c0_i32 = arith.constant 0 : i32
    %c0_i32_0 = arith.constant 0 : i32
    %c0_i32_1 = arith.constant 0 : i32
    return %c0_i32, %c0_i32_0 : i32, i32
  }
  func.func @transform_3(%arg0: i32) -> (i32, i32) {
    %c0_i32 = arith.constant 0 : i32
    %c0_i32_0 = arith.constant 0 : i32
    %c0_i32_1 = arith.constant 0 : i32
    return %c0_i32, %c0_i32_0 : i32, i32
  }
  func.func @transform_4(%arg0: i32) -> (i32, i32) {
    %c0_i32 = arith.constant 0 : i32
    %c0_i32_0 = arith.constant 0 : i32
    %c0_i32_1 = arith.constant 0 : i32
    return %c0_i32, %c0_i32_0 : i32, i32
  }
  func.func @transform_5(%arg0: i32) -> (i32, i32) {
    %c0_i32 = arith.constant 0 : i32
    %c0_i32_0 = arith.constant 0 : i32
    %c0_i32_1 = arith.constant 0 : i32
    return %c0_i32, %c0_i32_0 : i32, i32
  }
  func.func @transform_6(%arg0: i32) -> (i32, i32) {
    %c0_i32 = arith.constant 0 : i32
    %c0_i32_0 = arith.constant 0 : i32
    %c0_i32_1 = arith.constant 0 : i32
    return %c0_i32, %c0_i32_0 : i32, i32
  }
  func.func @transform_7(%arg0: i32) -> (i32, i32) {
    %c0_i32 = arith.constant 0 : i32
    %c0_i32_0 = arith.constant 0 : i32
    %c0_i32_1 = arith.constant 0 : i32
    return %c0_i32, %c0_i32_0 : i32, i32
  }
  func.func @transform_8(%arg0: i32) -> (i32, i32) {
    %c0_i32 = arith.constant 0 : i32
    %c0_i32_0 = arith.constant 0 : i32
    %c0_i32_1 = arith.constant 0 : i32
    return %c0_i32, %c0_i32_0 : i32, i32
  }
  func.func @transform_9(%arg0: i32) -> (i32, i32) {
    %c0_i32 = arith.constant 0 : i32
    %c0_i32_0 = arith.constant 0 : i32
    %c0_i32_1 = arith.constant 0 : i32
    return %c0_i32, %c0_i32_0 : i32, i32
  }
  func.func @transform_10(%arg0: i32) -> (i32, i32) {
    %c0_i32 = arith.constant 0 : i32
    %c0_i32_0 = arith.constant 0 : i32
    %c0_i32_1 = arith.constant 0 : i32
    return %c0_i32, %c0_i32_0 : i32, i32
  }
  func.func @transform_11(%arg0: i32) -> (i32, i32) {
    %c0_i32 = arith.constant 0 : i32
    %c0_i32_0 = arith.constant 0 : i32
    %c0_i32_1 = arith.constant 0 : i32
    return %c0_i32, %c0_i32_0 : i32, i32
  }
  func.func @transform_12(%arg0: i32) -> (i32, i32) {
    %c0_i32 = arith.constant 0 : i32
    %c0_i32_0 = arith.constant 0 : i32
    return %arg0, %c0_i32 : i32, i32
  }
}

</mosaic_0001>

<bundles_post_ra>
// kernel: tpu_custom_call.1
= control target key start
LH: loop header
LB: loop body
LE: loop exit
PB: predicated region body
PF: predicated region fallthrough
CT: control target
= control target key end

     0   :  { %17 = vsyncpa [#allocation3], 0  ;;  %s3141_s21 = smov 0   ;;  %s4200_s0 = inlined_call_operand.vmem [shape: f32[512,48], index: 0, kind: input, shape index: {}]   ;;  %s4201_s1 = inlined_call_operand.vmem [shape: f32[512,2], index: 1, kind: input, shape index: {}]   ;;  %s4202_s2 = inlined_call_operand.vmem [shape: f32[48,1], index: 2, kind: input, shape index: {}]   ;;  %s4203_s3 = inlined_call_operand.vmem [shape: f32[48,256], index: 3, kind: input, shape index: {}]   ;;  %s4204_s4 = inlined_call_operand.vmem [shape: f32[2,256], index: 4, kind: input, shape index: {}]   ;;  %s4205_s5 = inlined_call_operand.vmem [shape: f32[1,256], index: 5, kind: input, shape index: {}]   ;;  %s4206_s6 = inlined_call_operand.vmem [shape: f32[256,256], index: 6, kind: input, shape index: {}]   ;;  %s4207_s7 = inlined_call_operand.vmem [shape: f32[1,256], index: 7, kind: input, shape index: {}]   ;;  %s4208_s8 = inlined_call_operand.vmem [shape: f32[256,256], index: 8, kind: input, shape index: {}]   ;;  %s4209_s9 = inlined_call_operand.vmem [shape: f32[1,256], index: 9, kind: input, shape index: {}]   ;;  %s4210_s10 = inlined_call_operand.hbm [shape: f32[256,256], index: 10, kind: input, shape index: {}]   ;;  %s4211_s11 = inlined_call_operand.vmem [shape: f32[1,256], index: 11, kind: input, shape index: {}]   ;;  %s4212_s12 = inlined_call_operand.vmem [shape: f32[512,1], index: 12, kind: output, shape index: {}]  }
   0x1 LB: > { %s2294_s22 = sadd.s32 4294967295, %s3067_s21   ;;  %p2296_p0 = scmp.ge.s32.totalorder %s3067_s21, 1  ;;  %s3067_s21 = sphi %s3141_s21, %s23_s21  }
   0x2   : > { %p316_p1 = scmp.lt.s32.totalorder %s3067_s21, 5  ;;  %s3069_s23 = smov [#allocation2]  }
   0x3   : > { %s352_s24 = sshll.u32 %s3069_s23, 4  ;;  %p3155_p3 = scmp.eq.s32.totalorder %s2294_s22, 0  ;;  %s353_s24 = int_to_ptr.vmem [resolvable:$true] %s352_s24 }
   0x4   : > { %p3149_p2 = pnand %p2296_p0, %p316_p1  ;;  %s3029_s30 = scalar_lea.hbm %s4210_s10, 8192 }
   0x5   : > { %s4217_s26 = scalar_select %p3155_p3, 1, 0 }
   0x6   : > { %s4216_s25 = scalar_select %p3149_p2, 1, 0 }
   0x7   : > { %p2747_p4 = pneg %p3149_p2  ;;  %p3030_p6 = scmp.ne.s32.totalorder %s4210_s10, %s3029_s30 }
   0x8   : > { %p3036_p10 = scmp.lt.u32.totalorder %s3029_s30, %s4210_s10 }
   0x9   : > { %p3163_p5 = pnand %p3155_p3, %p2747_p4 }
   0xb   : > { %p3031_p7 = pneg %p3163_p5 }
   0xd   : > { %p3032_p8 = pnand %p3031_p7, %p3030_p6 }
   0xf   : > { %p3033_p9 = pneg %p3032_p8 }
  0x11   : > { %p3038_p11 = pnand %p3036_p10, %p3033_p9 }
  0x13   : > { %3041 = shalt.err (!%p3038_p11)
}
  0x14   : > { %s3042_s17 = scalar_lea.vmem %s353_s24, 8192  ;;  %p3050_p1 = scmp.lt.s32.totalorder %s353_s24, %s353_s24 }
  0x15   : > { %p3043_p12 = scmp.ne.s32.totalorder %s353_s24, %s3042_s17  ;;  %p3051_p4 = scmp.lt.s32.totalorder %s3042_s17, %s3042_s17 }
  0x17   : > { %p3045_p13 = pnand %p3043_p12, %p3031_p7  ;;  %p3052_p3 = por %p3051_p4, %p3050_p1 }
  0x19   : > { %p3046_p0 = pneg %p3045_p13 }
  0x1b   : > { %p3053_p2 = pnand %p3052_p3, %p3046_p0 }
  0x1d   : > { %3056 = shalt.err (!%p3053_p2)
}
  0x1e   : > { %s3070_s18 = smov 256   ;;  %s3071_s19 = smov 16  }
  0x1f   : > { %2750 = dma.hbm_to_vmem [thread:$0]  (!%p3163_p5), %s4210_s10, 8192, %s353_s24, [#allocation3], %s3070_s18, %s3070_s18, %s3071_s19  }
  0x20   : > { %p4219_p6 = scmp.ne.s32.totalorder %s4216_s25, 0 }
  0x21   : > { %p4220_p8 = scmp.ne.s32.totalorder (!%p4219_p6), %s4217_s26, 0 }
  0x22   : > { %389 = sbr.rel (%p4219_p6) target bundleno = 1213 (0x4bd), region = 68 }
  0x29   : > { %3062 = dma.done.wait (%p4220_p8), [#allocation3], 8192  }
  0x2a   : > { %3064 = vsyncadd (%p4220_p8), [#allocation3], 4294959104  ;;  %s2301_s28 = sshll.u32 %s2294_s22, 4  ;;  %v3072_v0 = vmov 0   ;;  %v3073_v3 = vmov 1   ;;  %v847_v5 = vld [vmem:[%s4206_s6 + $0x8] sm:$0xff] }
  0x2b   : > { %2770 = vset.pattern.permute.xlu1 %v3072_v0  ;;  %2768 = vset.pattern.permute.xlu0 %v3072_v0  ;;  %p437_p2 = scmp.lt.s32.totalorder %s2301_s28, 63  ;;  %v849_v6 = vld [vmem:[%s4206_s6 + $0x18] sm:$0xff]  ;;  %v846_v8 = vld [vmem:[%s4206_s6] sm:$0xff]  ;;  %v848_v9 = vld [vmem:[%s4206_s6 + $0x10] sm:$0xff]  ;;  %vm1665_vm0 = vcmask 392192   ;;  %vm2197_vm1 = vcmask 7168  }
  0x2c   : > { %v2479_v7 = vpack.c.bf16 %v849_v6, %v847_v5  ;;  %v851_v10 = vld [vmem:[%s4206_s6 + $0x28] sm:$0xff]  ;;  %v2481_v11 = vpack.c.bf16 %v848_v9, %v846_v8  ;;  %v853_v12 = vld [vmem:[%s4206_s6 + $0x38] sm:$0xff]  ;;  %v850_v13 = vld [vmem:[%s4206_s6 + $0x20] sm:$0xff] }
  0x2d   : > { %s4222_s28 = smov (!%p437_p2, %s2301_s28), 63  ;;  %v852_v14 = vld [vmem:[%s4206_s6 + $0x30] sm:$0xff]  ;;  %v2483_v15 = vpack.c.bf16 %v853_v12, %v851_v10  ;;  %v855_v16 = vld [vmem:[%s4206_s6 + $0x48] sm:$0xff]  ;;  %v857_v17 = vld [vmem:[%s4206_s6 + $0x58] sm:$0xff] }
  0x2e   : > { %s3191_s27 = sshll.u32 %s4222_s28, 3  ;;  %2480 = vmatprep.subr.bf16.mxu0 %v2479_v7  ;;  %v2485_v18 = vpack.c.bf16 %v852_v14, %v850_v13  ;;  %v2487_v19 = vpack.c.bf16 %v857_v17, %v855_v16  ;;  %v854_v20 = vld [vmem:[%s4206_s6 + $0x40] sm:$0xff]  ;;  %v856_v21 = vld [vmem:[%s4206_s6 + $0x50] sm:$0xff]  ;;  %v859_v23 = vld [vmem:[%s4206_s6 + $0x68] sm:$0xff] }
  0x2f   : > { %s3197_s29 = scalar_lea.vmem %s4201_s1, %s3191_s27  ;;  %2482 = vmatpush1.bf16.msra.mxu0 %v2481_v11  ;;  %v861_v24 = vld [vmem:[%s4206_s6 + $0x78] sm:$0xff]  ;;  %v2489_v25 = vpack.c.bf16 %v856_v21, %v854_v20  ;;  %v858_v27 = vld [vmem:[%s4206_s6 + $0x60] sm:$0xff]  ;;  %v860_v28 = vld [vmem:[%s4206_s6 + $0x70] sm:$0xff]  ;;  %s3939_s19 = scalar_lea.vmem %s4200_s0, %s3191_s27 }
  0x30   : > { %v471_v1 = vld [vmem:[%s3197_s29 + $0x8] sm:$0xff]  ;;  %v470_v2 = vld [vmem:[%s3197_s29] sm:$0xff]  ;;  %v472_v4 = vld [vmem:[%s3197_s29 + $0x10] sm:$0xff]  ;;  %2484 = vmatprep.subr.bf16.mxu0 %v2483_v15  ;;  %v2491_v26 = vpack.c.bf16 %v861_v24, %v859_v23  ;;  %v2493_v32 = vpack.c.bf16 %v860_v28, %v858_v27  ;;  %s4158_s20 = scalar_lea.vmem %s4212_s12, %s3191_s27 }
  0x31   : > { %501 = vperm.xlu1 %2770, %v471_v1   ;;  %496 = vperm.xlu0 %2768, %v470_v2   ;;  %v473_v22 = vld [vmem:[%s3197_s29 + $0x18] sm:$0xff]  ;;  %v474_v29 = vld [vmem:[%s3197_s29 + $0x20] sm:$0xff]  ;;  %v863_v30 = vld [vmem:[%s4206_s6 + $0x88] sm:$0xff] }
  0x32   : > { %v865_v31 = vld [vmem:[%s4206_s6 + $0x98] sm:$0xff]  ;;  %v862_v34 = vld [vmem:[%s4206_s6 + $0x80] sm:$0xff]  ;;  %v864_v35 = vld [vmem:[%s4206_s6 + $0x90] sm:$0xff] }
  0x33   : > { %2486 = vmatpush1.bf16.msra.mxu0 %v2485_v18  ;;  %v2495_v33 = vpack.c.bf16 %v865_v31, %v863_v30  ;;  %v475_v36 = vld [vmem:[%s3197_s29 + $0x28] sm:$0xff]  ;;  %v869_v38 = vld [vmem:[%s4206_s6 + $0xb8] sm:$0xff]  ;;  %v2497_v39 = vpack.c.bf16 %v864_v35, %v862_v34  ;;  %v866_v41 = vld [vmem:[%s4206_s6 + $0xa0] sm:$0xff] }
  0x34   : > { %2488 = vmatprep.subr.bf16.mxu0 %v2487_v19  ;;  %v867_v37 = vld [vmem:[%s4206_s6 + $0xa8] sm:$0xff]  ;;  %v868_v42 = vld [vmem:[%s4206_s6 + $0xb0] sm:$0xff]  ;;  %v873_v45 = vld [vmem:[%s4206_s6 + $0xd8] sm:$0xff] }
  0x35   : > { %2771 = vset.pattern.permute.xlu1 %v3073_v3  ;;  %2769 = vset.pattern.permute.xlu0 %v3073_v3  ;;  %v2499_v40 = vpack.c.bf16 %v869_v38, %v867_v37  ;;  %v476_v43 = vld [vmem:[%s3197_s29 + $0x30] sm:$0xff]  ;;  %v871_v44 = vld [vmem:[%s4206_s6 + $0xc8] sm:$0xff]  ;;  %v2501_v46 = vpack.c.bf16 %v868_v42, %v866_v41  ;;  %v870_v48 = vld [vmem:[%s4206_s6 + $0xc0] sm:$0xff] }
  0x36   : > { %630 = vperm.xlu1 %2771, %v471_v1   ;;  %626 = vperm.xlu0 %2769, %v470_v2   ;;  %v2503_v47 = vpack.c.bf16 %v873_v45, %v871_v44  ;;  %v872_v49 = vld [vmem:[%s4206_s6 + $0xd0] sm:$0xff]  ;;  %v477_v50 = vld [vmem:[%s3197_s29 + $0x38] sm:$0xff]  ;;  %v875_v51 = vld [vmem:[%s4206_s6 + $0xe8] sm:$0xff] }
  0x37   : > { %2490 = vmatpush1.bf16.msra.mxu0 %v2489_v25  ;;  %v877_v52 = vld [vmem:[%s4206_s6 + $0xf8] sm:$0xff]  ;;  %v2505_v53 = vpack.c.bf16 %v872_v49, %v870_v48  ;;  %v874_v55 = vld [vmem:[%s4206_s6 + $0xe0] sm:$0xff]  ;;  %v876_v56 = vld [vmem:[%s4206_s6 + $0xf0] sm:$0xff] }
  0x38   : > { %2492 = vmatprep.subr.bf16.mxu0 %v2491_v26  ;;  %v2507_v54 = vpack.c.bf16 %v877_v52, %v875_v51  ;;  %v478_v57 = vld [vmem:[%s3197_s29 + $0x40] sm:$0xff]  ;;  %v879_v58 = vld [vmem:[%s4206_s6 + $0x108] sm:$0xff]  ;;  %v881_v59 = vld [vmem:[%s4206_s6 + $0x118] sm:$0xff]  ;;  %v2509_v60 = vpack.c.bf16 %v876_v56, %v874_v55 }
  0x39   : > { %v2511_v61 = vpack.c.bf16 %v881_v59, %v879_v58  ;;  %v878_v62 = vld [vmem:[%s4206_s6 + $0x100] sm:$0xff]  ;;  %v880_v63 = vld [vmem:[%s4206_s6 + $0x110] sm:$0xff]  ;;  %v883_v1 = vld [vmem:[%s4206_s6 + $0x128] sm:$0xff] }
  0x3a   : > { %2772 = vset.pattern.permute.xlu1 %v3072_v0  ;;  %634 = vperm.xlu0 %2769, %v472_v4   ;;  %v479_v0 = vld [vmem:[%s3197_s29 + $0x48] sm:$0xff]  ;;  %v885_v2 = vld [vmem:[%s4206_s6 + $0x138] sm:$0xff]  ;;  %v2513_v3 = vpack.c.bf16 %v880_v63, %v878_v62  ;;  %v882_v5 = vld [vmem:[%s4206_s6 + $0x120] sm:$0xff] }
  0x3b   : > { %506 = vperm.xlu1 %2772, %v472_v4   ;;  %2494 = vmatpush1.bf16.msra.mxu0 %v2493_v32  ;;  %v2515_v4 = vpack.c.bf16 %v885_v2, %v883_v1  ;;  %v884_v6 = vld [vmem:[%s4206_s6 + $0x130] sm:$0xff]  ;;  %v887_v8 = vld [vmem:[%s4206_s6 + $0x148] sm:$0xff]  ;;  %v889_v9 = vld [vmem:[%s4206_s6 + $0x158] sm:$0xff] }
  0x3c   : > { %2496 = vmatprep.subr.bf16.mxu0 %v2495_v33  ;;  %v480_v7 = vld [vmem:[%s3197_s29 + $0x50] sm:$0xff]  ;;  %v2517_v10 = vpack.c.bf16 %v884_v6, %v882_v5  ;;  %v2519_v11 = vpack.c.bf16 %v889_v9, %v887_v8  ;;  %v886_v12 = vld [vmem:[%s4206_s6 + $0x140] sm:$0xff]  ;;  %v481_v14 = vld [vmem:[%s3197_s29 + $0x58] sm:$0xff] }
  0x3d   : > { %v888_v13 = vld [vmem:[%s4206_s6 + $0x150] sm:$0xff]  ;;  %v891_v15 = vld [vmem:[%s4206_s6 + $0x168] sm:$0xff]  ;;  %v893_v16 = vld [vmem:[%s4206_s6 + $0x178] sm:$0xff] }
  0x3e   : > { %638 = vperm.xlu0 %2769, %v473_v22   ;;  %v2521_v17 = vpack.c.bf16 %v888_v13, %v886_v12  ;;  %v2523_v18 = vpack.c.bf16 %v893_v16, %v891_v15  ;;  %v890_v19 = vld [vmem:[%s4206_s6 + $0x160] sm:$0xff]  ;;  %v892_v20 = vld [vmem:[%s4206_s6 + $0x170] sm:$0xff]  ;;  %v897_v23 = vld [vmem:[%s4206_s6 + $0x198] sm:$0xff] }
  0x3f   : > { %511 = vperm.xlu1 %2772, %v473_v22   ;;  %2498 = vmatpush1.bf16.msra.mxu0 %v2497_v39  ;;  %v482_v21 = vld [vmem:[%s3197_s29 + $0x60] sm:$0xff]  ;;  %v895_v22 = vld [vmem:[%s4206_s6 + $0x188] sm:$0xff]  ;;  %v2525_v24 = vpack.c.bf16 %v892_v20, %v890_v19  ;;  %v896_v27 = vld [vmem:[%s4206_s6 + $0x190] sm:$0xff] }
  0x40   : > { %2500 = vmatprep.subr.bf16.mxu0 %v2499_v40  ;;  %v2527_v25 = vpack.c.bf16 %v897_v23, %v895_v22  ;;  %v894_v26 = vld [vmem:[%s4206_s6 + $0x180] sm:$0xff]  ;;  %v483_v28 = vld [vmem:[%s3197_s29 + $0x68] sm:$0xff]  ;;  %v901_v30 = vld [vmem:[%s4206_s6 + $0x1b8] sm:$0xff] }
  0x41   : > { %v2529_v31 = vpack.c.bf16 %v896_v27, %v894_v26  ;;  %v898_v33 = vld [vmem:[%s4206_s6 + $0x1a0] sm:$0xff]  ;;  %v900_v34 = vld [vmem:[%s4206_s6 + $0x1b0] sm:$0xff]  ;;  %v905_v37 = vld [vmem:[%s4206_s6 + $0x1d8] sm:$0xff] }
  0x42   : > { %642 = vperm.xlu0 %2769, %v474_v29   ;;  %v484_v35 = vld [vmem:[%s3197_s29 + $0x70] sm:$0xff]  ;;  %v2533_v38 = vpack.c.bf16 %v900_v34, %v898_v33  ;;  %v902_v40 = vld [vmem:[%s4206_s6 + $0x1c0] sm:$0xff]  ;;  %v485_v42 = vld [vmem:[%s3197_s29 + $0x78] sm:$0xff] }
  0x43   : > { %516 = vperm.xlu1 %2772, %v474_v29   ;;  %2502 = vmatpush1.bf16.msra.mxu0 %v2501_v46  ;;  %v899_v29 = vld [vmem:[%s4206_s6 + $0x1a8] sm:$0xff]  ;;  %v904_v41 = vld [vmem:[%s4206_s6 + $0x1d0] sm:$0xff]  ;;  %v909_v44 = vld [vmem:[%s4206_s6 + $0x1f8] sm:$0xff] }
  0x44   : > { %2504 = vmatprep.subr.bf16.mxu0 %v2503_v47  ;;  %v2531_v32 = vpack.c.bf16 %v901_v30, %v899_v29  ;;  %v2537_v45 = vpack.c.bf16 %v904_v41, %v902_v40  ;;  %v906_v47 = vld [vmem:[%s4206_s6 + $0x1e0] sm:$0xff]  ;;  %v908_v48 = vld [vmem:[%s4206_s6 + $0x1f0] sm:$0xff]  ;;  %v1118_v51 = vld [vmem:[%s4208_s8 + $0x18] sm:$0xff]  ;;  %v575_v30 = vlaneseq }
  0x45   : > { %v2541_v49 = vpack.c.bf16 %v908_v48, %v906_v47  ;;  %v1115_v52 = vld [vmem:[%s4208_s8] sm:$0xff]  ;;  %v1120_v55 = vld [vmem:[%s4208_s8 + $0x28] sm:$0xff]  ;;  %v1122_v56 = vld [vmem:[%s4208_s8 + $0x38] sm:$0xff] }
  0x46   : > { %646 = vperm.xlu0 %2769, %v475_v36   ;;  %v2547_v58 = vpack.c.bf16 %v1122_v56, %v1120_v55  ;;  %v1119_v59 = vld [vmem:[%s4208_s8 + $0x20] sm:$0xff]  ;;  %v1126_v62 = vld [vmem:[%s4208_s8 + $0x58] sm:$0xff]  ;;  %v1125_v2 = vld [vmem:[%s4208_s8 + $0x50] sm:$0xff] }
  0x47   : > { %521 = vperm.xlu1 %2772, %v475_v36   ;;  %2506 = vmatpush1.bf16.msra.mxu0 %v2505_v53  ;;  %v903_v36 = vld [vmem:[%s4206_s6 + $0x1c8] sm:$0xff]  ;;  %v1123_v1 = vld [vmem:[%s4208_s8 + $0x40] sm:$0xff]  ;;  %v1129_v8 = vld [vmem:[%s4208_s8 + $0x70] sm:$0xff] }
  0x48   : > { %2508 = vmatprep.subr.bf16.mxu0 %v2507_v54  ;;  %v2535_v39 = vpack.c.bf16 %v905_v37, %v903_v36  ;;  %v1117_v54 = vld [vmem:[%s4208_s8 + $0x10] sm:$0xff]  ;;  %v2553_v5 = vpack.c.bf16 %v1125_v2, %v1123_v1  ;;  %v1132_v9 = vld [vmem:[%s4208_s8 + $0x88] sm:$0xff]  ;;  %v1131_v13 = vld [vmem:[%s4208_s8 + $0x80] sm:$0xff]  ;;  %v576_v37 = vshrl.u32 %v575_v30, 7 }
  0x49   : > { %v1136_v15 = vld [vmem:[%s4208_s8 + $0xa8] sm:$0xff]  ;;  %v1138_v16 = vld [vmem:[%s4208_s8 + $0xb8] sm:$0xff]  ;;  %v1135_v19 = vld [vmem:[%s4208_s8 + $0xa0] sm:$0xff] }
  0x4a   : > { %650 = vperm.xlu0 %2769, %v476_v43   ;;  %v1137_v20 = vld [vmem:[%s4208_s8 + $0xb0] sm:$0xff]  ;;  %v1142_v22 = vld [vmem:[%s4208_s8 + $0xd8] sm:$0xff]  ;;  %v1144_v27 = vld [vmem:[%s4208_s8 + $0xe8] sm:$0xff] }
  0x4b   : > { %526 = vperm.xlu1 %2772, %v476_v43   ;;  %2510 = vmatpush1.bf16.msra.mxu0 %v2509_v60  ;;  %v907_v43 = vld [vmem:[%s4206_s6 + $0x1e8] sm:$0xff]  ;;  %v1121_v60 = vld [vmem:[%s4208_s8 + $0x30] sm:$0xff]  ;;  %v2565_v23 = vpack.c.bf16 %v1137_v20, %v1135_v19  ;;  %v1151_v47 = vld [vmem:[%s4208_s8 + $0x120] sm:$0xff] }
  0x4c   : > { %2512 = vmatprep.subr.bf16.mxu0 %v2511_v61  ;;  %v2539_v46 = vpack.c.bf16 %v909_v44, %v907_v43  ;;  %v1124_v61 = vld [vmem:[%s4208_s8 + $0x48] sm:$0xff]  ;;  %v2549_v63 = vpack.c.bf16 %v1121_v60, %v1119_v59  ;;  %v1141_v26 = vld [vmem:[%s4208_s8 + $0xd0] sm:$0xff]  ;;  %v3521_v44 = vsub.s32 0, %v576_v37 }
  0x4d   : > { %v1145_v33 = vld [vmem:[%s4208_s8 + $0xf0] sm:$0xff]  ;;  %v1148_v34 = vld [vmem:[%s4208_s8 + $0x108] sm:$0xff] }
  0x4e   : > { %654 = vperm.xlu0 %2769, %v477_v50   ;;  %v1149_v40 = vld [vmem:[%s4208_s8 + $0x110] sm:$0xff]  ;;  %v1152_v41 = vld [vmem:[%s4208_s8 + $0x128] sm:$0xff] }
  0x4f   : > { %531 = vperm.xlu1 %2772, %v477_v50   ;;  %2514 = vmatpush1.bf16.msra.mxu0 %v2513_v3  ;;  %v1116_v50 = vld [vmem:[%s4208_s8 + $0x8] sm:$0xff]  ;;  %v1153_v48 = vld [vmem:[%s4208_s8 + $0x130] sm:$0xff] }
  0x50   : > { %2516 = vmatprep.subr.bf16.mxu0 %v2515_v4  ;;  %v2543_v53 = vpack.c.bf16 %v1118_v51, %v1116_v50  ;;  %v1128_v3 = vld [vmem:[%s4208_s8 + $0x68] sm:$0xff]  ;;  %v1130_v4 = vld [vmem:[%s4208_s8 + $0x78] sm:$0xff]  ;;  %v3532_v50 = vsub.s32 1, %v576_v37  ;;  %v695_v51 = vsub.s32 3, %v576_v37 }
  0x51   : > { %v2555_v6 = vpack.c.bf16 %v1130_v4, %v1128_v3 }
  0x52   : > { %658 = vperm.xlu0 %2769, %v478_v57   ;;  %2544 = vmatprep.subr.bf16.mxu1 %v2543_v53  ;;  %v1158_v53 = vld [vmem:[%s4208_s8 + $0x158] sm:$0xff] }
  0x53   : > { %536 = vperm.xlu1 %2772, %v478_v57   ;;  %2518 = vmatpush1.bf16.msra.mxu0 %v2517_v10  ;;  %v2545_v57 = vpack.c.bf16 %v1117_v54, %v1115_v52  ;;  %v1134_v10 = vld [vmem:[%s4208_s8 + $0x98] sm:$0xff]  ;;  %v1156_v52 = vld [vmem:[%s4208_s8 + $0x148] sm:$0xff]  ;;  %v2581_v54 = vpack.c.bf16 %v1153_v48, %v1151_v47 }
  0x54   : > { %2520 = vmatprep.subr.bf16.mxu0 %v2519_v11  ;;  %v2559_v12 = vpack.c.bf16 %v1134_v10, %v1132_v9  ;;  %v2583_v56 = vpack.c.bf16 %v1158_v53, %v1156_v52  ;;  %v493_v10 = vld [vmem:[%s4205_s5] sm:$0x3] }
  0x55   : > { %2546 = vmatpush1.bf16.msra.mxu1 %v2545_v57  ;;  %v1155_v57 = vld [vmem:[%s4208_s8 + $0x140] sm:$0xff]  ;;  %v3581_v19 = vrot.slane %v493_v10, %v3521_v44  ;;  %v3584_v20 = vrot.slane %v493_v10, %v3532_v50 }
  0x56   : > { %662 = vperm.xlu0 %2769, %v479_v0   ;;  %2548 = vmatprep.subr.bf16.mxu1 %v2547_v58  ;;  %v1157_v58 = vld [vmem:[%s4208_s8 + $0x150] sm:$0xff] }
  0x57   : > { %541 = vperm.xlu1 %2772, %v479_v0   ;;  %2522 = vmatpush1.bf16.msra.mxu0 %v2521_v17  ;;  %v2551_v0 = vpack.c.bf16 %v1126_v62, %v1124_v61  ;;  %v1160_v62 = vld [vmem:[%s4208_s8 + $0x168] sm:$0xff]  ;;  %v2585_v2 = vpack.c.bf16 %v1157_v58, %v1155_v57 }
  0x58   : > { %2524 = vmatprep.subr.bf16.mxu0 %v2523_v18  ;;  %v2563_v18 = vpack.c.bf16 %v1138_v16, %v1136_v15 }
  0x59   : > { %2550 = vmatpush1.bf16.msra.mxu1 %v2549_v63  ;;  %v1162_v63 = vld [vmem:[%s4208_s8 + $0x178] sm:$0xff] }
  0x5a   : > { %666 = vperm.xlu0 %2769, %v480_v7   ;;  %2552 = vmatprep.subr.bf16.mxu1 %v2551_v0  ;;  %v2587_v4 = vpack.c.bf16 %v1162_v63, %v1160_v62 }
  0x5b   : > { %546 = vperm.xlu1 %2772, %v480_v7   ;;  %2526 = vmatpush1.bf16.msra.mxu0 %v2525_v24  ;;  %v1127_v7 = vld [vmem:[%s4208_s8 + $0x60] sm:$0xff] }
  0x5c   : > { %2528 = vmatprep.subr.bf16.mxu0 %v2527_v25  ;;  %v2557_v11 = vpack.c.bf16 %v1129_v8, %v1127_v7  ;;  %v1139_v25 = vld [vmem:[%s4208_s8 + $0xc0] sm:$0xff] }
  0x5d   : > { %2554 = vmatpush1.bf16.msra.mxu1 %v2553_v5  ;;  %v2569_v29 = vpack.c.bf16 %v1141_v26, %v1139_v25  ;;  %v1159_v5 = vld [vmem:[%s4208_s8 + $0x160] sm:$0xff] }
  0x5e   : > { %670 = vperm.xlu0 %2769, %v481_v14   ;;  %2556 = vmatprep.subr.bf16.mxu1 %v2555_v6  ;;  %v1161_v6 = vld [vmem:[%s4208_s8 + $0x170] sm:$0xff] }
  0x5f   : > { %551 = vperm.xlu1 %2772, %v481_v14   ;;  %2530 = vmatpush1.bf16.msra.mxu0 %v2529_v31  ;;  %v1133_v14 = vld [vmem:[%s4208_s8 + $0x90] sm:$0xff] }
  0x60   : > { %2532 = vmatprep.subr.bf16.mxu0 %v2531_v32  ;;  %v2561_v17 = vpack.c.bf16 %v1133_v14, %v1131_v13  ;;  %v1143_v32 = vld [vmem:[%s4208_s8 + $0xe0] sm:$0xff] }
  0x61   : > { %2558 = vmatpush1.bf16.msra.mxu1 %v2557_v11  ;;  %v2573_v36 = vpack.c.bf16 %v1145_v33, %v1143_v32  ;;  %v2589_v11 = vpack.c.bf16 %v1161_v6, %v1159_v5 }
  0x62   : > { %674 = vperm.xlu0 %2769, %v482_v21   ;;  %2560 = vmatprep.subr.bf16.mxu1 %v2559_v12 }
  0x63   : > { %556 = vperm.xlu1 %2772, %v482_v21   ;;  %2534 = vmatpush1.bf16.msra.mxu0 %v2533_v38  ;;  %v1140_v21 = vld [vmem:[%s4208_s8 + $0xc8] sm:$0xff] }
  0x64   : > { %2536 = vmatprep.subr.bf16.mxu0 %v2535_v39  ;;  %v2567_v24 = vpack.c.bf16 %v1142_v22, %v1140_v21  ;;  %v1147_v39 = vld [vmem:[%s4208_s8 + $0x100] sm:$0xff] }
  0x65   : > { %2562 = vmatpush1.bf16.msra.mxu1 %v2561_v17  ;;  %v2577_v43 = vpack.c.bf16 %v1149_v40, %v1147_v39 }
  0x66   : > { %678 = vperm.xlu0 %2769, %v483_v28   ;;  %2564 = vmatprep.subr.bf16.mxu1 %v2563_v18 }
  0x67   : > { %561 = vperm.xlu1 %2772, %v483_v28   ;;  %2538 = vmatpush1.bf16.msra.mxu0 %v2537_v45  ;;  %v1146_v28 = vld [vmem:[%s4208_s8 + $0xf8] sm:$0xff]  ;;  %v581_v45 = vsub.s32 2, %v576_v37 }
  0x68   : > { %2540 = vmatprep.subr.bf16.mxu0 %v2539_v46  ;;  %v2571_v31 = vpack.c.bf16 %v1146_v28, %v1144_v27 }
  0x69   : > { %2566 = vmatpush1.bf16.msra.mxu1 %v2565_v23 }
  0x6a   : > { %682 = vperm.xlu0 %2769, %v484_v35   ;;  %2568 = vmatprep.subr.bf16.mxu1 %v2567_v24 }
  0x6b   : > { %566 = vperm.xlu1 %2772, %v484_v35   ;;  %2542 = vmatpush1.bf16.msra.mxu0 %v2541_v49  ;;  %v1150_v35 = vld [vmem:[%s4208_s8 + $0x118] sm:$0xff]  ;;  %v492_v49 = vld [vmem:[%s4204_s4] sm:$0xf] }
  0x6c   : > { %v2575_v38 = vpack.c.bf16 %v1150_v35, %v1148_v34  ;;  %v578_v55 = vrot.slane %v492_v49, %v3521_v44  ;;  %v582_v59 = vrot.slane %v492_v49, %v581_v45  ;;  %v692_v60 = vrot.slane %v492_v49, %v3532_v50 }
  0x6d   : > { %2570 = vmatpush1.bf16.msra.mxu1 %v2569_v29  ;;  %v696_v61 = vrot.slane %v492_v49, %v695_v51 }
  0x6e   : > { %686 = vperm.xlu0 %2769, %v485_v42   ;;  %2572 = vmatprep.subr.bf16.mxu1 %v2571_v31  ;;  %v3555_v3 = vrot.slane %v578_v55, %v3521_v44  ;;  %v3564_v7 = vrot.slane %v582_v59, %v3521_v44  ;;  %v3567_v8 = vrot.slane %v692_v60, %v3532_v50 }
  0x6f   : > { %571 = vperm.xlu1 %2772, %v485_v42   ;;  %v1154_v42 = vld [vmem:[%s4208_s8 + $0x138] sm:$0xff]  ;;  %v3570_v9 = vrot.slane %v696_v61, %v3532_v50 }
  0x70   : > { %v2579_v46 = vpack.c.bf16 %v1154_v42, %v1152_v41 }
  0x71   : > { %2574 = vmatpush1.bf16.msra.mxu1 %v2573_v36 }
  0x72   : > { %2576 = vmatprep.subr.bf16.mxu1 %v2575_v38 }
  0x75   : > { %2578 = vmatpush1.bf16.msra.mxu1 %v2577_v43 }
  0x76   : > { %2580 = vmatprep.subr.bf16.mxu1 %v2579_v46 }
  0x79   : > { %2582 = vmatpush1.bf16.msra.mxu1 %v2581_v54 }
  0x7a   : > { %2584 = vmatprep.subr.bf16.mxu1 %v2583_v56 }
  0x7d   : > { %2586 = vmatpush1.bf16.msra.mxu1 %v2585_v2 }
  0x7e   : > { %2588 = vmatprep.subr.bf16.mxu1 %v2587_v4 }
  0x81   : > { %2590 = vmatpush1.bf16.msra.mxu1 %v2589_v11 }
  0xb0   : > { %v497_v0 = vpop.permute.xlu0 %496  ;;  %v502_v1 = vpop.permute.xlu1 %501 }
  0xb1   : > { %v593_v12 = vmul.f32 %v3555_v3, %v497_v0  ;;  %v594_v15 = vmul.f32 %v3564_v7, %v497_v0  ;;  %v596_v21 = vmul.f32 %v3564_v7, %v502_v1  ;;  %v595_v26 = vmul.f32 %v3555_v3, %v502_v1 }
  0xb5   : > { %v631_v13 = vpop.permute.xlu1 %630  ;;  %v627_v14 = vpop.permute.xlu0 %626 }
  0xb6   : > { %v710_v16 = vmul.f32 %v3570_v9, %v631_v13  ;;  %v707_v17 = vmul.f32 %v3567_v8, %v627_v14  ;;  %v708_v18 = vmul.f32 %v3570_v9, %v627_v14  ;;  %v709_v22 = vmul.f32 %v3567_v8, %v631_v13 }
  0xb8   : > { %v739_v23 = vadd.f32 %v707_v17, %v593_v12  ;;  %v740_v24 = vadd.f32 %v708_v18, %v594_v15  ;;  %v742_v27 = vadd.f32 %v710_v16, %v596_v21  ;;  %v741_v32 = vadd.f32 %v709_v22, %v595_v26 }
  0xb9   : > { %v635_v25 = vpop.permute.xlu0 %634 }
  0xba   : > { %v507_v28 = vpop.permute.xlu1 %506  ;;  %v782_v29 = vadd.f32 %v3581_v19, %v739_v23  ;;  %v712_v30 = vmul.f32 %v3570_v9, %v635_v25  ;;  %v783_v33 = vadd.f32 %v3584_v20, %v740_v24  ;;  %v711_v34 = vmul.f32 %v3567_v8, %v635_v25 }
  0xbb   : > { %v598_v31 = vmul.f32 %v3564_v7, %v507_v28  ;;  %v597_v35 = vmul.f32 %v3555_v3, %v507_v28  ;;  %v785_v38 = vadd.f32 %v3584_v20, %v742_v27  ;;  %v784_v42 = vadd.f32 %v3581_v19, %v741_v32 }
  0xbc   : > { %2773 = vtanh.f32 %v782_v29 }
  0xbd   : > { %v744_v36 = vadd.f32 %v712_v30, %v598_v31  ;;  %v639_v37 = vpop.permute.xlu0 %638  ;;  %2775 = vtanh.f32 %v783_v33  ;;  %v743_v45 = vadd.f32 %v711_v34, %v597_v35 }
  0xbe   : > { %v714_v39 = vmul.f32 %v3570_v9, %v639_v37  ;;  %v512_v40 = vpop.permute.xlu1 %511  ;;  %v713_v46 = vmul.f32 %v3567_v8, %v639_v37  ;;  %2777 = vtanh.f32 %v785_v38 }
  0xbf   : > { %v600_v41 = vmul.f32 %v3564_v7, %v512_v40  ;;  %v787_v43 = vadd.f32 %v3584_v20, %v744_v36  ;;  %v599_v47 = vmul.f32 %v3555_v3, %v512_v40  ;;  %v786_v57 = vadd.f32 %v3581_v19, %v743_v45 }
  0xc1   : > { %v746_v48 = vadd.f32 %v714_v39, %v600_v41  ;;  %v643_v49 = vpop.permute.xlu0 %642  ;;  %2779 = vtanh.f32 %v787_v43  ;;  %v745_v58 = vadd.f32 %v713_v46, %v599_v47 }
  0xc2   : > { %v716_v51 = vmul.f32 %v3570_v9, %v643_v49  ;;  %v517_v52 = vpop.permute.xlu1 %516  ;;  %v715_v53 = vmul.f32 %v3567_v8, %v643_v49  ;;  %2781 = vtanh.f32 %v784_v42 }
  0xc3   : > { %v601_v54 = vmul.f32 %v3555_v3, %v517_v52  ;;  %v602_v55 = vmul.f32 %v3564_v7, %v517_v52  ;;  %v789_v56 = vadd.f32 %v3584_v20, %v746_v48  ;;  %v788_v6 = vadd.f32 %v3581_v19, %v745_v58 }
  0xc5   : > { %v748_v59 = vadd.f32 %v716_v51, %v602_v55  ;;  %v647_v60 = vpop.permute.xlu0 %646  ;;  %v747_v63 = vadd.f32 %v715_v53, %v601_v54  ;;  %2783 = vtanh.f32 %v789_v56 }
  0xc6   : > { %v718_v61 = vmul.f32 %v3570_v9, %v647_v60  ;;  %v522_v62 = vpop.permute.xlu1 %521  ;;  %v717_v2 = vmul.f32 %v3567_v8, %v647_v60  ;;  %v2774_v5 = vpop.eup %2773  ;;  %2785 = vtanh.f32 %v786_v57 }
  0xc7   : > { %v604_v0 = vmul.f32 %v3564_v7, %v522_v62  ;;  %v791_v1 = vadd.f32 %v3584_v20, %v748_v59  ;;  %v603_v4 = vmul.f32 %v3555_v3, %v522_v62  ;;  %v2776_v12 = vpop.eup %2775  ;;  %v790_v15 = vadd.f32 %v3581_v19, %v747_v63 }
  0xc8   : > { %986 = vmatprep.mubr.f32.mxu0 %v2776_v12  ;;  %v2778_v17 = vpop.eup %2777 }
  0xc9   : > { %v750_v10 = vadd.f32 %v718_v61, %v604_v0  ;;  %v651_v11 = vpop.permute.xlu0 %650  ;;  %2787 = vtanh.f32 %v791_v1  ;;  %v749_v18 = vadd.f32 %v717_v2, %v603_v4  ;;  %987 = vmatmul.mubr.f32.vlgmr.msra.gmra.mrb[0].mxu0 %v2774_v5 }
  0xca   : > { %v720_v13 = vmul.f32 %v3570_v9, %v651_v11  ;;  %v527_v14 = vpop.permute.xlu1 %526  ;;  %2789 = vtanh.f32 %v788_v6  ;;  %992 = vmatprep.mubr.f32.mxu0 %v2778_v17  ;;  %v719_v22 = vmul.f32 %v3567_v8, %v651_v11 }
  0xcb   : > { %v606_v16 = vmul.f32 %v3564_v7, %v527_v14  ;;  %v793_v21 = vadd.f32 %v3584_v20, %v750_v10  ;;  %v605_v23 = vmul.f32 %v3555_v3, %v527_v14  ;;  %v2780_v26 = vpop.eup %2779  ;;  %2791 = vtanh.f32 %v790_v15 }
  0xcc   : > { %v2782_v29 = vpop.eup %2781  ;;  %v792_v31 = vadd.f32 %v3581_v19, %v749_v18 }
  0xcd   : > { %v752_v24 = vadd.f32 %v720_v13, %v606_v16  ;;  %v655_v25 = vpop.permute.xlu0 %654  ;;  %2793 = vtanh.f32 %v793_v21  ;;  %993 = vmatmul.mubr.f32.gmra.mrb[2].mxu0 %v2782_v29  ;;  %v751_v33 = vadd.f32 %v719_v22, %v605_v23 }
  0xce   : > { %v722_v27 = vmul.f32 %v3570_v9, %v655_v25  ;;  %v532_v28 = vpop.permute.xlu1 %531  ;;  %998 = vmatprep.mubr.f32.mxu0 %v2780_v26  ;;  %v721_v34 = vmul.f32 %v3567_v8, %v655_v25 }
  0xcf   : > { %v608_v30 = vmul.f32 %v3564_v7, %v532_v28  ;;  %v795_v32 = vadd.f32 %v3584_v20, %v752_v24  ;;  %v607_v35 = vmul.f32 %v3555_v3, %v532_v28  ;;  %v2784_v38 = vpop.eup %2783  ;;  %v794_v47 = vadd.f32 %v3581_v19, %v751_v33 }
  0xd0   : > { %v2786_v41 = vpop.eup %2785 }
  0xd1   : > { %v754_v36 = vadd.f32 %v722_v27, %v608_v30  ;;  %v659_v37 = vpop.permute.xlu0 %658  ;;  %2795 = vtanh.f32 %v795_v32  ;;  %999 = vmatmul.mubr.f32.gmra.mrb[4].mxu0 %v2786_v41  ;;  %v753_v48 = vadd.f32 %v721_v34, %v607_v35 }
  0xd2   : > { %v724_v39 = vmul.f32 %v3570_v9, %v659_v37  ;;  %v537_v40 = vpop.permute.xlu1 %536  ;;  %v723_v42 = vmul.f32 %v3567_v8, %v659_v37  ;;  %2797 = vtanh.f32 %v792_v31  ;;  %1004 = vmatprep.mubr.f32.mxu0 %v2784_v38 }
  0xd3   : > { %v609_v43 = vmul.f32 %v3555_v3, %v537_v40  ;;  %v610_v45 = vmul.f32 %v3564_v7, %v537_v40  ;;  %v797_v46 = vadd.f32 %v3584_v20, %v754_v36  ;;  %v2788_v52 = vpop.eup %2787  ;;  %v796_v62 = vadd.f32 %v3581_v19, %v753_v48 }
  0xd4   : > { %v2790_v55 = vpop.eup %2789 }
  0xd5   : > { %v756_v49 = vadd.f32 %v724_v39, %v610_v45  ;;  %v663_v51 = vpop.permute.xlu0 %662  ;;  %v755_v56 = vadd.f32 %v723_v42, %v609_v43  ;;  %2799 = vtanh.f32 %v797_v46  ;;  %1005 = vmatmul.mubr.f32.gmra.mrb[6].mxu0 %v2790_v55  ;;  %v2792_v61 = vpop.eup %2791 }
  0xd6   : > { %v726_v53 = vmul.f32 %v3570_v9, %v663_v51  ;;  %v542_v54 = vpop.permute.xlu1 %541  ;;  %v725_v59 = vmul.f32 %v3567_v8, %v663_v51  ;;  %2801 = vtanh.f32 %v794_v47  ;;  %1010 = vmatprep.mubr.f32.mxu0 %v2788_v52 }
  0xd7   : > { %v612_v57 = vmul.f32 %v3564_v7, %v542_v54  ;;  %v799_v58 = vadd.f32 %v3584_v20, %v756_v49  ;;  %v611_v60 = vmul.f32 %v3555_v3, %v542_v54  ;;  %v2794_v1 = vpop.eup %2793  ;;  %v798_v5 = vadd.f32 %v3581_v19, %v755_v56 }
  0xd9   : > { %v758_v63 = vadd.f32 %v726_v53, %v612_v57  ;;  %v667_v0 = vpop.permute.xlu0 %666  ;;  %2803 = vtanh.f32 %v799_v58  ;;  %v757_v10 = vadd.f32 %v725_v59, %v611_v60  ;;  %1011 = vmatmul.mubr.f32.gmra.mrb[8].mxu0 %v2792_v61 }
  0xda   : > { %v728_v2 = vmul.f32 %v3570_v9, %v667_v0  ;;  %v547_v4 = vpop.permute.xlu1 %546  ;;  %2805 = vtanh.f32 %v796_v62  ;;  %1016 = vmatprep.mubr.f32.mxu0 %v2794_v1  ;;  %v727_v12 = vmul.f32 %v3567_v8, %v667_v0 }
  0xdb   : > { %v614_v6 = vmul.f32 %v3564_v7, %v547_v4  ;;  %v801_v11 = vadd.f32 %v3584_v20, %v758_v63  ;;  %v613_v13 = vmul.f32 %v3555_v3, %v547_v4  ;;  %v2796_v16 = vpop.eup %2795  ;;  %2807 = vtanh.f32 %v798_v5 }
  0xdc   : > { %v2798_v21 = vpop.eup %2797  ;;  %v800_v23 = vadd.f32 %v3581_v19, %v757_v10 }
  0xdd   : > { %v760_v14 = vadd.f32 %v728_v2, %v614_v6  ;;  %v671_v15 = vpop.permute.xlu0 %670  ;;  %2809 = vtanh.f32 %v801_v11  ;;  %1017 = vmatmul.mubr.f32.gmra.mrb[10].mxu0 %v2798_v21  ;;  %v759_v25 = vadd.f32 %v727_v12, %v613_v13 }
  0xde   : > { %v730_v17 = vmul.f32 %v3570_v9, %v671_v15  ;;  %v552_v18 = vpop.permute.xlu1 %551  ;;  %1022 = vmatprep.mubr.f32.mxu0 %v2796_v16  ;;  %v729_v26 = vmul.f32 %v3567_v8, %v671_v15 }
  0xdf   : > { %v616_v22 = vmul.f32 %v3564_v7, %v552_v18  ;;  %v803_v24 = vadd.f32 %v3584_v20, %v760_v14  ;;  %v615_v27 = vmul.f32 %v3555_v3, %v552_v18  ;;  %v2800_v30 = vpop.eup %2799  ;;  %v802_v38 = vadd.f32 %v3581_v19, %v759_v25 }
  0xe0   : > { %v2802_v33 = vpop.eup %2801 }
  0xe1   : > { %v762_v28 = vadd.f32 %v730_v17, %v616_v22  ;;  %v675_v29 = vpop.permute.xlu0 %674  ;;  %2811 = vtanh.f32 %v803_v24  ;;  %1023 = vmatmul.mubr.f32.gmra.mrb[12].mxu0 %v2802_v33  ;;  %v761_v39 = vadd.f32 %v729_v26, %v615_v27  ;;  %v1163_v33 = vld [vmem:[%s4208_s8 + $0x180] sm:$0xff] }
  0xe2   : > { %v732_v31 = vmul.f32 %v3570_v9, %v675_v29  ;;  %v557_v32 = vpop.permute.xlu1 %556  ;;  %v731_v34 = vmul.f32 %v3567_v8, %v675_v29  ;;  %2813 = vtanh.f32 %v800_v23  ;;  %1028 = vmatprep.mubr.f32.mxu0 %v2800_v30 }
  0xe3   : > { %v617_v35 = vmul.f32 %v3555_v3, %v557_v32  ;;  %v618_v36 = vmul.f32 %v3564_v7, %v557_v32  ;;  %v805_v37 = vadd.f32 %v3584_v20, %v762_v28  ;;  %v2804_v42 = vpop.eup %2803  ;;  %v804_v54 = vadd.f32 %v3581_v19, %v761_v39  ;;  %v1167_v39 = vld [vmem:[%s4208_s8 + $0x1a0] sm:$0xff] }
  0xe4   : > { %v2806_v46 = vpop.eup %2805 }
  0xe5   : > { %v764_v40 = vadd.f32 %v732_v31, %v618_v36  ;;  %v679_v41 = vpop.permute.xlu0 %678  ;;  %v763_v47 = vadd.f32 %v731_v34, %v617_v35  ;;  %2815 = vtanh.f32 %v805_v37  ;;  %1029 = vmatmul.mubr.f32.gmra.mrb[14].mxu0 %v2806_v46  ;;  %v2808_v53 = vpop.eup %2807  ;;  %v1164_v31 = vld [vmem:[%s4208_s8 + $0x188] sm:$0xff]  ;;  %v1165_v34 = vld [vmem:[%s4208_s8 + $0x190] sm:$0xff]  ;;  %v1170_v37 = vld [vmem:[%s4208_s8 + $0x1b8] sm:$0xff] }
  0xe6   : > { %v734_v43 = vmul.f32 %v3570_v9, %v679_v41  ;;  %v562_v45 = vpop.permute.xlu1 %561  ;;  %v733_v51 = vmul.f32 %v3567_v8, %v679_v41  ;;  %2817 = vtanh.f32 %v802_v38  ;;  %1034 = vmatprep.mubr.f32.mxu0 %v2804_v42  ;;  %v2593_v35 = vpack.c.bf16 %v1165_v34, %v1163_v33  ;;  %v1168_v36 = vld [vmem:[%s4208_s8 + $0x1a8] sm:$0xff]  ;;  %v1171_v46 = vld [vmem:[%s4208_s8 + $0x1c0] sm:$0xff]  ;;  %v1415_v34 = vld [vmem:[#allocation2 + $0xf8] sm:$0xff] }
  0xe7   : > { %v620_v48 = vmul.f32 %v3564_v7, %v562_v45  ;;  %v807_v49 = vadd.f32 %v3584_v20, %v764_v40  ;;  %v619_v52 = vmul.f32 %v3555_v3, %v562_v45  ;;  %v2810_v57 = vpop.eup %2809  ;;  %v806_v60 = vadd.f32 %v3581_v19, %v763_v47  ;;  %v1169_v40 = vld [vmem:[%s4208_s8 + $0x1b0] sm:$0xff]  ;;  %v1172_v42 = vld [vmem:[%s4208_s8 + $0x1c8] sm:$0xff] }
  0xe8   : > { %v2595_v38 = vpack.c.bf16 %v1170_v37, %v1168_v36  ;;  %v2597_v41 = vpack.c.bf16 %v1169_v40, %v1167_v39  ;;  %v1173_v47 = vld [vmem:[%s4208_s8 + $0x1d0] sm:$0xff]  ;;  %v1413_v33 = vld [vmem:[#allocation2 + $0xe8] sm:$0xff]  ;;  %v1412_v37 = vld [vmem:[#allocation2 + $0xe0] sm:$0xff] }
  0xe9   : > { %v766_v55 = vadd.f32 %v734_v43, %v620_v48  ;;  %v683_v56 = vpop.permute.xlu0 %682  ;;  %2819 = vtanh.f32 %v807_v49  ;;  %v765_v62 = vadd.f32 %v733_v51, %v619_v52  ;;  %1035 = vmatmul.mubr.f32.gmra.mrb[16].mxu0 %v2808_v53  ;;  %v1174_v43 = vld [vmem:[%s4208_s8 + $0x1d8] sm:$0xff]  ;;  %v2601_v48 = vpack.c.bf16 %v1173_v47, %v1171_v46  ;;  %v1176_v49 = vld [vmem:[%s4208_s8 + $0x1e8] sm:$0xff]  ;;  %v1175_v53 = vld [vmem:[%s4208_s8 + $0x1e0] sm:$0xff] }
  0xea   : > { %v736_v58 = vmul.f32 %v3570_v9, %v683_v56  ;;  %v567_v59 = vpop.permute.xlu1 %566  ;;  %2821 = vtanh.f32 %v804_v54  ;;  %1040 = vmatprep.mubr.f32.mxu0 %v2810_v57  ;;  %v735_v0 = vmul.f32 %v3567_v8, %v683_v56  ;;  %v2599_v45 = vpack.c.bf16 %v1174_v43, %v1172_v42  ;;  %v1178_v51 = vld [vmem:[%s4208_s8 + $0x1f8] sm:$0xff]  ;;  %v1177_v54 = vld [vmem:[%s4208_s8 + $0x1f0] sm:$0xff]  ;;  %v1385_v56 = vld [vmem:[#allocation2 + $0x8] sm:$0xff] }
  0xeb   : > { %v622_v61 = vmul.f32 %v3564_v7, %v567_v59  ;;  %v809_v63 = vadd.f32 %v3584_v20, %v766_v55  ;;  %v621_v1 = vmul.f32 %v3555_v3, %v567_v59  ;;  %v2812_v5 = vpop.eup %2811  ;;  %2823 = vtanh.f32 %v806_v60  ;;  %v1387_v57 = vld [vmem:[#allocation2 + $0x18] sm:$0xff]  ;;  %v1386_v60 = vld [vmem:[#allocation2 + $0x10] sm:$0xff]  ;;  %v1417_v39 = vld [vmem:[#allocation2 + $0x108] sm:$0xff] }
  0xec   : > { %v2814_v11 = vpop.eup %2813  ;;  %v808_v13 = vadd.f32 %v3581_v19, %v765_v62  ;;  %v2603_v52 = vpack.c.bf16 %v1178_v51, %v1176_v49  ;;  %v2605_v55 = vpack.c.bf16 %v1177_v54, %v1175_v53  ;;  %v2607_v59 = vpack.c.bf16 %v1387_v57, %v1385_v56  ;;  %v1391_v62 = vld [vmem:[#allocation2 + $0x38] sm:$0xff]  ;;  %v1416_v43 = vld [vmem:[#allocation2 + $0x100] sm:$0xff]  ;;  %v1421_v46 = vld [vmem:[#allocation2 + $0x128] sm:$0xff] }
  0xed   : > { %v768_v2 = vadd.f32 %v736_v58, %v622_v61  ;;  %v687_v4 = vpop.permute.xlu0 %686  ;;  %2825 = vtanh.f32 %v809_v63  ;;  %1041 = vmatmul.mubr.f32.gmra.mrb[18].mxu0 %v2814_v11  ;;  %v767_v15 = vadd.f32 %v735_v0, %v621_v1  ;;  %v1384_v58 = vld [vmem:[#allocation2] sm:$0xff]  ;;  %v1389_v61 = vld [vmem:[#allocation2 + $0x28] sm:$0xff]  ;;  %v3763_v36 = vpack.c.bf16 %v1415_v34, %v1413_v33  ;;  %v1419_v40 = vld [vmem:[#allocation2 + $0x118] sm:$0xff] }
  0xee   : > { %v738_v6 = vmul.f32 %v3570_v9, %v687_v4  ;;  %v572_v10 = vpop.permute.xlu1 %571  ;;  %1046 = vmatprep.mubr.f32.mxu0 %v2812_v5  ;;  %v737_v16 = vmul.f32 %v3567_v8, %v687_v4  ;;  %v3725_v63 = vpack.c.bf16 %v1386_v60, %v1384_v58  ;;  %v3727_v0 = vpack.c.bf16 %v1391_v62, %v1389_v61  ;;  %v1388_v1 = vld [vmem:[#allocation2 + $0x20] sm:$0xff]  ;;  %v1393_v4 = vld [vmem:[#allocation2 + $0x48] sm:$0xff]  ;;  %v1395_v5 = vld [vmem:[#allocation2 + $0x58] sm:$0xff] }
  0xef   : > { %v624_v12 = vmul.f32 %v3564_v7, %v572_v10  ;;  %v811_v14 = vadd.f32 %v3584_v20, %v768_v2  ;;  %v623_v17 = vmul.f32 %v3555_v3, %v572_v10  ;;  %v2816_v21 = vpop.eup %2815  ;;  %v810_v7 = vadd.f32 %v3581_v19, %v767_v15  ;;  %v1390_v2 = vld [vmem:[#allocation2 + $0x30] sm:$0xff]  ;;  %2608 = vmatprep.subr.bf16.mxu0 %v2607_v59  ;;  %v1392_v11 = vld [vmem:[#allocation2 + $0x40] sm:$0xff]  ;;  %v1423_v47 = vld [vmem:[#allocation2 + $0x138] sm:$0xff] }
  0xf0   : > { %v2818_v9 = vpop.eup %2817  ;;  %2610 = vmatpush1.bf16.msra.mxu0 %v3725_v63  ;;  %v3733_v10 = vpack.c.bf16 %v1395_v5, %v1393_v4  ;;  %v3769_v42 = vpack.c.bf16 %v1419_v40, %v1417_v39  ;;  %v3775_v49 = vpack.c.bf16 %v1423_v47, %v1421_v46  ;;  %v1420_v51 = vld [vmem:[#allocation2 + $0x120] sm:$0xff]  ;;  %v1425_v53 = vld [vmem:[#allocation2 + $0x148] sm:$0xff]  ;;  %v1427_v54 = vld [vmem:[#allocation2 + $0x158] sm:$0xff] }
  0xf1   : > { %v770_v18 = vadd.f32 %v738_v6, %v624_v12  ;;  %2827 = vtanh.f32 %v811_v14  ;;  %1047 = vmatmul.mubr.f32.gmra.mrb[20].mxu0 %v2818_v9  ;;  %v769_v23 = vadd.f32 %v737_v16, %v623_v17  ;;  %v3730_v6 = vpack.c.bf16 %v1390_v2, %v1388_v1  ;;  %2612 = vmatprep.subr.bf16.mxu0 %v3727_v0  ;;  %v1394_v12 = vld [vmem:[#allocation2 + $0x50] sm:$0xff]  ;;  %v1399_v14 = vld [vmem:[#allocation2 + $0x78] sm:$0xff]  ;;  %v1396_v17 = vld [vmem:[#allocation2 + $0x60] sm:$0xff] }
  0xf2   : > { %2829 = vtanh.f32 %v808_v13  ;;  %1052 = vmatprep.mubr.f32.mxu0 %v2816_v21  ;;  %v1397_v13 = vld [vmem:[#allocation2 + $0x68] sm:$0xff]  ;;  %v3736_v15 = vpack.c.bf16 %v1394_v12, %v1392_v11  ;;  %v1403_v9 = vld [vmem:[#allocation2 + $0x98] sm:$0xff]  ;;  %v3781_v56 = vpack.c.bf16 %v1427_v54, %v1425_v53  ;;  %v1424_v57 = vld [vmem:[#allocation2 + $0x140] sm:$0xff] }
  0xf3   : > { %v813_v22 = vadd.f32 %v3584_v20, %v770_v18  ;;  %v2820_v24 = vpop.eup %2819  ;;  %v812_v3 = vadd.f32 %v3581_v19, %v769_v23  ;;  %v1166_v19 = vld [vmem:[%s4208_s8 + $0x198] sm:$0xff]  ;;  %v3739_v16 = vpack.c.bf16 %v1399_v14, %v1397_v13  ;;  %v1398_v18 = vld [vmem:[#allocation2 + $0x70] sm:$0xff]  ;;  %v1401_v21 = vld [vmem:[#allocation2 + $0x88] sm:$0xff] }
  0xf4   : > { %v2822_v25 = vpop.eup %2821  ;;  %v2591_v32 = vpack.c.bf16 %v1166_v19, %v1164_v31  ;;  %2614 = vmatpush1.bf16.msra.mxu0 %v3730_v6  ;;  %v1400_v23 = vld [vmem:[#allocation2 + $0x80] sm:$0xff]  ;;  %v1426_v58 = vld [vmem:[#allocation2 + $0x150] sm:$0xff]  ;;  %v1431_v60 = vld [vmem:[#allocation2 + $0x178] sm:$0xff] }
  0xf5   : > { %2831 = vtanh.f32 %v813_v22  ;;  %1053 = vmatmul.mubr.f32.gmra.mrb[22].mxu0 %v2822_v25  ;;  %v2824_v26 = vpop.eup %2823  ;;  %2616 = vmatprep.subr.bf16.mxu0 %v3733_v10  ;;  %v3742_v22 = vpack.c.bf16 %v1398_v18, %v1396_v17  ;;  %v1405_v25 = vld [vmem:[#allocation2 + $0xa8] sm:$0xff]  ;;  %v1408_v19 = vld [vmem:[#allocation2 + $0xc0] sm:$0xff]  ;;  %v3784_v61 = vpack.c.bf16 %v1426_v58, %v1424_v57  ;;  %v1430_v2 = vld [vmem:[#allocation2 + $0x170] sm:$0xff] }
  0xf6   : > { %2833 = vtanh.f32 %v810_v7  ;;  %1058 = vmatprep.mubr.f32.mxu0 %v2820_v24  ;;  %2592 = vmatprep.subr.bf16.mxu1 %v2591_v32  ;;  %v3745_v7 = vpack.c.bf16 %v1403_v9, %v1401_v21  ;;  %v1402_v24 = vld [vmem:[#allocation2 + $0x90] sm:$0xff]  ;;  %v1428_v1 = vld [vmem:[#allocation2 + $0x160] sm:$0xff] }
  0xf7   : > { %v2826_v8 = vpop.eup %2825  ;;  %2835 = vtanh.f32 %v812_v3  ;;  %2594 = vmatpush1.bf16.msra.mxu1 %v2593_v35  ;;  %v3748_v3 = vpack.c.bf16 %v1402_v24, %v1400_v23  ;;  %v1410_v32 = vld [vmem:[#allocation2 + $0xd0] sm:$0xff]  ;;  %v3790_v4 = vpack.c.bf16 %v1430_v2, %v1428_v1  ;;  %v910_v5 = vld [vmem:[%s4207_s7] sm:$0x3] }
  0xf8   : > { %2596 = vmatprep.subr.bf16.mxu1 %v2595_v38  ;;  %2618 = vmatpush1.bf16.msra.mxu0 %v3736_v15  ;;  %v3760_v35 = vpack.c.bf16 %v1410_v32, %v1408_v19  ;;  %v1414_v38 = vld [vmem:[#allocation2 + $0xf0] sm:$0xff]  ;;  %v3798_v11 = vrot.slane %v910_v5, %v3521_v44  ;;  %v3801_v12 = vrot.slane %v910_v5, %v3532_v50 }
  0xf9   : > { %1059 = vmatmul.mubr.f32.gmra.mrb[24].mxu0 %v2824_v26  ;;  %2620 = vmatprep.subr.bf16.mxu0 %v3739_v16  ;;  %v1407_v26 = vld [vmem:[#allocation2 + $0xb8] sm:$0xff] }
  0xfa   : > { %1064 = vmatprep.mubr.f32.mxu0 %v2826_v8  ;;  %v3751_v8 = vpack.c.bf16 %v1407_v26, %v1405_v25 }
  0xfb   : > { %v2828_v20 = vpop.eup %2827  ;;  %2598 = vmatpush1.bf16.msra.mxu1 %v2597_v41  ;;  %v3766_v41 = vpack.c.bf16 %v1414_v38, %v1412_v37 }
  0xfc   : > { %v2830_v27 = vpop.eup %2829  ;;  %2600 = vmatprep.subr.bf16.mxu1 %v2599_v45  ;;  %2622 = vmatpush1.bf16.msra.mxu0 %v3742_v22  ;;  %v1418_v45 = vld [vmem:[#allocation2 + $0x110] sm:$0xff] }
  0xfd   : > { %1065 = vmatmul.mubr.f32.gmra.mrb[26].mxu0 %v2830_v27  ;;  %2624 = vmatprep.subr.bf16.mxu0 %v3745_v7  ;;  %v1406_v27 = vld [vmem:[#allocation2 + $0xb0] sm:$0xff] }
  0xfe   : > { %1070 = vmatprep.mubr.f32.mxu0 %v2828_v20  ;;  %v1404_v20 = vld [vmem:[#allocation2 + $0xa0] sm:$0xff] }
  0xff   : > { %v2832_v28 = vpop.eup %2831  ;;  %2602 = vmatpush1.bf16.msra.mxu1 %v2601_v48  ;;  %v3772_v48 = vpack.c.bf16 %v1418_v45, %v1416_v43 }
 0x100   : > { %v2834_v29 = vpop.eup %2833  ;;  %2604 = vmatprep.subr.bf16.mxu1 %v2603_v52  ;;  %2626 = vmatpush1.bf16.msra.mxu0 %v3748_v3  ;;  %v1422_v52 = vld [vmem:[#allocation2 + $0x130] sm:$0xff] }
 0x101   : > { %1071 = vmatmul.mubr.f32.gmra.mrb[28].mxu0 %v2834_v29  ;;  %v2836_v30 = vpop.eup %2835  ;;  %v1411_v29 = vld [vmem:[#allocation2 + $0xd8] sm:$0xff]  ;;  %2628 = vmatprep.subr.bf16.mxu0 %v3751_v8 }
 0x102   : > { %1076 = vmatprep.mubr.f32.mxu0 %v2832_v28  ;;  %v1409_v28 = vld [vmem:[#allocation2 + $0xc8] sm:$0xff] }
 0x103   : > { %2606 = vmatpush1.bf16.msra.mxu1 %v2605_v55  ;;  %v3757_v31 = vpack.c.bf16 %v1411_v29, %v1409_v28  ;;  %v3778_v55 = vpack.c.bf16 %v1422_v52, %v1420_v51 }
 0x104   : > { %2711 = vmatprep.subr.bf16.mxu1 %v2607_v59  ;;  %v1429_v59 = vld [vmem:[#allocation2 + $0x168] sm:$0xff] }
 0x105   : > { %1077 = vmatmul.mubr.f32.gmra.mrb[30].mxu0 %v2836_v30  ;;  %v3754_v30 = vpack.c.bf16 %v1406_v27, %v1404_v20  ;;  %v3787_v62 = vpack.c.bf16 %v1431_v60, %v1429_v59 }
 0x107   : > { %2630 = vmatpush1.bf16.msra.mxu0 %v3754_v30 }
 0x108   : > { %2632 = vmatprep.subr.bf16.mxu0 %v3757_v31 }
 0x10b   : > { %2634 = vmatpush1.bf16.msra.mxu0 %v3760_v35 }
 0x10c   : > { %2636 = vmatprep.subr.bf16.mxu0 %v3763_v36 }
 0x10f   : > { %2638 = vmatpush1.bf16.msra.mxu0 %v3766_v41 }
 0x110   : > { %2640 = vmatprep.subr.bf16.mxu0 %v3769_v42 }
 0x113   : > { %2642 = vmatpush1.bf16.msra.mxu0 %v3772_v48 }
 0x114   : > { %2644 = vmatprep.subr.bf16.mxu0 %v3775_v49 }
 0x117   : > { %2646 = vmatpush1.bf16.msra.mxu0 %v3778_v55 }
 0x118   : > { %2648 = vmatprep.subr.bf16.mxu0 %v3781_v56 }
 0x11b   : > { %2650 = vmatpush1.bf16.msra.mxu0 %v3784_v61 }
 0x11c   : > { %2652 = vmatprep.subr.bf16.mxu0 %v3787_v62 }
 0x11f   : > { %2654 = vmatpush1.bf16.msra.mxu0 %v3790_v4 }
 0x19c   : > { %v988_v13 = vpop.f32.mrb[0].mxu0 }
 0x19d   : > { %v989_v14 = vadd.f32 %v988_v13, %v3798_v11  ;;  %v990_v17 = vpop.f32.mrb[1].mxu0 }
 0x19e   : > { %v991_v18 = vadd.f32 %v990_v17, %v3801_v12 }
 0x1a0   : > { %2837 = vtanh.f32 %v991_v18  ;;  %v994_v21 = vpop.f32.mrb[2].mxu0 }
 0x1a1   : > { %2839 = vtanh.f32 %v989_v14  ;;  %v995_v9 = vadd.f32 %v994_v21, %v3798_v11  ;;  %v996_v23 = vpop.f32.mrb[3].mxu0 }
 0x1a2   : > { %v997_v24 = vadd.f32 %v996_v23, %v3801_v12 }
 0x1a4   : > { %2841 = vtanh.f32 %v997_v24  ;;  %v1000_v25 = vpop.f32.mrb[4].mxu0 }
 0x1a5   : > { %2843 = vtanh.f32 %v995_v9  ;;  %v1001_v26 = vadd.f32 %v1000_v25, %v3798_v11  ;;  %v1002_v20 = vpop.f32.mrb[5].mxu0 }
 0x1a6   : > { %v1003_v27 = vadd.f32 %v1002_v20, %v3801_v12 }
 0x1a8   : > { %2845 = vtanh.f32 %v1003_v27  ;;  %v1006_v28 = vpop.f32.mrb[6].mxu0 }
 0x1a9   : > { %2847 = vtanh.f32 %v1001_v26  ;;  %v1007_v29 = vadd.f32 %v1006_v28, %v3798_v11  ;;  %v1008_v19 = vpop.f32.mrb[7].mxu0 }
 0x1aa   : > { %v2838_v32 = vpop.eup %2837  ;;  %v1009_v33 = vadd.f32 %v1008_v19, %v3801_v12 }
 0x1ab   : > { %v2840_v34 = vpop.eup %2839  ;;  %1255 = vmatprep.mubr.f32.mxu1 %v2838_v32 }
 0x1ac   : > { %2849 = vtanh.f32 %v1009_v33  ;;  %v1012_v37 = vpop.f32.mrb[8].mxu0  ;;  %1256 = vmatmul.mubr.f32.vlgmr.msra.gmra.mrb[0].mxu1 %v2840_v34 }
 0x1ad   : > { %2851 = vtanh.f32 %v1007_v29  ;;  %v1013_v38 = vadd.f32 %v1012_v37, %v3798_v11  ;;  %v1014_v39 = vpop.f32.mrb[9].mxu0  ;;  %2727 = vmatpush1.bf16.msra.mxu1 %v3725_v63 }
 0x1ae   : > { %v2842_v40 = vpop.eup %2841  ;;  %v1015_v43 = vadd.f32 %v1014_v39, %v3801_v12  ;;  %2712 = vmatprep.subr.bf16.mxu1 %v3727_v0 }
 0x1af   : > { %v2844_v45 = vpop.eup %2843  ;;  %1261 = vmatprep.mubr.f32.mxu1 %v2842_v40 }
 0x1b0   : > { %2853 = vtanh.f32 %v1015_v43  ;;  %v1018_v46 = vpop.f32.mrb[10].mxu0  ;;  %1262 = vmatmul.mubr.f32.gmra.mrb[2].mxu1 %v2844_v45 }
 0x1b1   : > { %2855 = vtanh.f32 %v1013_v38  ;;  %v1019_v47 = vadd.f32 %v1018_v46, %v3798_v11  ;;  %v1020_v51 = vpop.f32.mrb[11].mxu0  ;;  %2728 = vmatpush1.bf16.msra.mxu1 %v3730_v6 }
 0x1b2   : > { %v2846_v52 = vpop.eup %2845  ;;  %v1021_v53 = vadd.f32 %v1020_v51, %v3801_v12  ;;  %2713 = vmatprep.subr.bf16.mxu1 %v3733_v10 }
 0x1b3   : > { %v2848_v63 = vpop.eup %2847  ;;  %1267 = vmatprep.mubr.f32.mxu1 %v2846_v52 }
 0x1b4   : > { %2857 = vtanh.f32 %v1021_v53  ;;  %v1024_v0 = vpop.f32.mrb[12].mxu0  ;;  %1268 = vmatmul.mubr.f32.gmra.mrb[4].mxu1 %v2848_v63 }
 0x1b5   : > { %2859 = vtanh.f32 %v1019_v47  ;;  %v1025_v54 = vadd.f32 %v1024_v0, %v3798_v11  ;;  %v1026_v57 = vpop.f32.mrb[13].mxu0  ;;  %2729 = vmatpush1.bf16.msra.mxu1 %v3736_v15 }
 0x1b6   : > { %v2850_v58 = vpop.eup %2849  ;;  %v1027_v59 = vadd.f32 %v1026_v57, %v3801_v12  ;;  %2714 = vmatprep.subr.bf16.mxu1 %v3739_v16 }
 0x1b7   : > { %v2852_v6 = vpop.eup %2851  ;;  %1273 = vmatprep.mubr.f32.mxu1 %v2850_v58 }
 0x1b8   : > { %2861 = vtanh.f32 %v1027_v59  ;;  %v1030_v10 = vpop.f32.mrb[14].mxu0  ;;  %1274 = vmatmul.mubr.f32.gmra.mrb[6].mxu1 %v2852_v6 }
 0x1b9   : > { %2863 = vtanh.f32 %v1025_v54  ;;  %v1031_v60 = vadd.f32 %v1030_v10, %v3798_v11  ;;  %v1032_v1 = vpop.f32.mrb[15].mxu0  ;;  %2730 = vmatpush1.bf16.msra.mxu1 %v3742_v22  ;;  %v1435_v10 = vld [vmem:[#allocation2 + $0x198] sm:$0xff] }
 0x1ba   : > { %v2854_v2 = vpop.eup %2853  ;;  %v1033_v5 = vadd.f32 %v1032_v1, %v3801_v12  ;;  %2715 = vmatprep.subr.bf16.mxu1 %v3745_v7  ;;  %v1434_v1 = vld [vmem:[#allocation2 + $0x190] sm:$0xff] }
 0x1bb   : > { %v2856_v15 = vpop.eup %2855  ;;  %1279 = vmatprep.mubr.f32.mxu1 %v2854_v2 }
 0x1bc   : > { %2865 = vtanh.f32 %v1033_v5  ;;  %v1036_v16 = vpop.f32.mrb[16].mxu0  ;;  %1280 = vmatmul.mubr.f32.gmra.mrb[8].mxu1 %v2856_v15  ;;  %v1437_v5 = vld [vmem:[#allocation2 + $0x1a8] sm:$0xff]  ;;  %v1439_v15 = vld [vmem:[#allocation2 + $0x1b8] sm:$0xff] }
 0x1bd   : > { %2867 = vtanh.f32 %v1031_v60  ;;  %v1037_v13 = vadd.f32 %v1036_v16, %v3798_v11  ;;  %v1038_v14 = vpop.f32.mrb[17].mxu0  ;;  %2731 = vmatpush1.bf16.msra.mxu1 %v3748_v3  ;;  %v1432_v60 = vld [vmem:[#allocation2 + $0x180] sm:$0xff]  ;;  %v2659_v16 = vpack.c.bf16 %v1439_v15, %v1437_v5 }
 0x1be   : > { %v2858_v17 = vpop.eup %2857  ;;  %v1039_v18 = vadd.f32 %v1038_v14, %v3801_v12  ;;  %2716 = vmatprep.subr.bf16.mxu1 %v3751_v8  ;;  %v2657_v2 = vpack.c.bf16 %v1434_v1, %v1432_v60  ;;  %v1438_v14 = vld [vmem:[#allocation2 + $0x1b0] sm:$0xff] }
 0x1bf   : > { %v2860_v22 = vpop.eup %2859  ;;  %1285 = vmatprep.mubr.f32.mxu1 %v2858_v17 }
 0x1c0   : > { %2869 = vtanh.f32 %v1039_v18  ;;  %v1042_v7 = vpop.f32.mrb[18].mxu0  ;;  %1286 = vmatmul.mubr.f32.gmra.mrb[10].mxu1 %v2860_v22  ;;  %v1441_v18 = vld [vmem:[#allocation2 + $0x1c8] sm:$0xff]  ;;  %v1443_v22 = vld [vmem:[#allocation2 + $0x1d8] sm:$0xff] }
 0x1c1   : > { %2871 = vtanh.f32 %v1037_v13  ;;  %v1043_v21 = vadd.f32 %v1042_v7, %v3798_v11  ;;  %v1044_v9 = vpop.f32.mrb[19].mxu0  ;;  %2732 = vmatpush1.bf16.msra.mxu1 %v3754_v30  ;;  %v1436_v13 = vld [vmem:[#allocation2 + $0x1a0] sm:$0xff]  ;;  %v2663_v7 = vpack.c.bf16 %v1443_v22, %v1441_v18 }
 0x1c2   : > { %v2862_v23 = vpop.eup %2861  ;;  %v1045_v24 = vadd.f32 %v1044_v9, %v3801_v12  ;;  %2717 = vmatprep.subr.bf16.mxu1 %v3757_v31  ;;  %v2661_v17 = vpack.c.bf16 %v1438_v14, %v1436_v13  ;;  %v1442_v9 = vld [vmem:[#allocation2 + $0x1d0] sm:$0xff] }
 0x1c3   : > { %v2864_v3 = vpop.eup %2863  ;;  %1291 = vmatprep.mubr.f32.mxu1 %v2862_v23 }
 0x1c4   : > { %2873 = vtanh.f32 %v1045_v24  ;;  %v1048_v8 = vpop.f32.mrb[20].mxu0  ;;  %1292 = vmatmul.mubr.f32.gmra.mrb[12].mxu1 %v2864_v3  ;;  %v1445_v24 = vld [vmem:[#allocation2 + $0x1e8] sm:$0xff]  ;;  %v1447_v3 = vld [vmem:[#allocation2 + $0x1f8] sm:$0xff] }
 0x1c5   : > { %2875 = vtanh.f32 %v1043_v21  ;;  %v1049_v25 = vadd.f32 %v1048_v8, %v3798_v11  ;;  %v1050_v26 = vpop.f32.mrb[21].mxu0  ;;  %2733 = vmatpush1.bf16.msra.mxu1 %v3760_v35  ;;  %v1440_v21 = vld [vmem:[#allocation2 + $0x1c0] sm:$0xff]  ;;  %v2667_v8 = vpack.c.bf16 %v1447_v3, %v1445_v24 }
 0x1c6   : > { %v2866_v20 = vpop.eup %2865  ;;  %v1051_v27 = vadd.f32 %v1050_v26, %v3801_v12  ;;  %2718 = vmatprep.subr.bf16.mxu1 %v3763_v36  ;;  %v2665_v23 = vpack.c.bf16 %v1442_v9, %v1440_v21  ;;  %v1446_v26 = vld [vmem:[#allocation2 + $0x1f0] sm:$0xff] }
 0x1c7   : > { %v2868_v30 = vpop.eup %2867  ;;  %1297 = vmatprep.mubr.f32.mxu1 %v2866_v20 }
 0x1c8   : > { %2877 = vtanh.f32 %v1051_v27  ;;  %v1054_v31 = vpop.f32.mrb[22].mxu0  ;;  %1298 = vmatmul.mubr.f32.gmra.mrb[14].mxu1 %v2868_v30  ;;  %v1654_v27 = vld [vmem:[%s4203_s3 + $0x8] sm:$0xff]  ;;  %v1656_v30 = vld [vmem:[%s4203_s3 + $0x18] sm:$0xff] }
 0x1c9   : > { %2879 = vtanh.f32 %v1049_v25  ;;  %v1055_v28 = vadd.f32 %v1054_v31, %v3798_v11  ;;  %v1056_v29 = vpop.f32.mrb[23].mxu0  ;;  %2734 = vmatpush1.bf16.msra.mxu1 %v3766_v41  ;;  %v1444_v25 = vld [vmem:[#allocation2 + $0x1e0] sm:$0xff]  ;;  %v2671_v31 = vpack.c.bf16 %v1656_v30, %v1654_v27 }
 0x1ca   : > { %v2870_v19 = vpop.eup %2869  ;;  %v1057_v32 = vadd.f32 %v1056_v29, %v3801_v12  ;;  %2719 = vmatprep.subr.bf16.mxu1 %v3769_v42  ;;  %v2669_v20 = vpack.c.bf16 %v1446_v26, %v1444_v25 }
 0x1cb   : > { %v2872_v35 = vpop.eup %2871  ;;  %1303 = vmatprep.mubr.f32.mxu1 %v2870_v19 }
 0x1cc   : > { %2881 = vtanh.f32 %v1057_v32  ;;  %v1060_v36 = vpop.f32.mrb[24].mxu0  ;;  %1304 = vmatmul.mubr.f32.gmra.mrb[16].mxu1 %v2872_v35 }
 0x1cd   : > { %2883 = vtanh.f32 %v1055_v28  ;;  %v1061_v33 = vadd.f32 %v1060_v36, %v3798_v11  ;;  %v1062_v34 = vpop.f32.mrb[25].mxu0  ;;  %2735 = vmatpush1.bf16.msra.mxu1 %v3772_v48  ;;  %v1179_v28 = vld [vmem:[%s4209_s9] sm:$0x3] }
 0x1ce   : > { %v2874_v37 = vpop.eup %2873  ;;  %v1063_v38 = vadd.f32 %v1062_v34, %v3801_v12  ;;  %2720 = vmatprep.subr.bf16.mxu1 %v3775_v49  ;;  %v3868_v29 = vrot.slane %v1179_v28, %v3521_v44  ;;  %v3871_v19 = vrot.slane %v1179_v28, %v3532_v50 }
 0x1cf   : > { %v2876_v41 = vpop.eup %2875  ;;  %1309 = vmatprep.mubr.f32.mxu1 %v2874_v37 }
 0x1d0   : > { %2885 = vtanh.f32 %v1063_v38  ;;  %v1066_v42 = vpop.f32.mrb[26].mxu0  ;;  %1310 = vmatmul.mubr.f32.gmra.mrb[18].mxu1 %v2876_v41 }
 0x1d1   : > { %2887 = vtanh.f32 %v1061_v33  ;;  %v1067_v39 = vadd.f32 %v1066_v42, %v3798_v11  ;;  %v1068_v40 = vpop.f32.mrb[27].mxu0  ;;  %2736 = vmatpush1.bf16.msra.mxu1 %v3778_v55 }
 0x1d2   : > { %v2878_v43 = vpop.eup %2877  ;;  %v1069_v45 = vadd.f32 %v1068_v40, %v3801_v12  ;;  %2721 = vmatprep.subr.bf16.mxu1 %v3781_v56 }
 0x1d3   : > { %v2880_v48 = vpop.eup %2879  ;;  %1315 = vmatprep.mubr.f32.mxu1 %v2878_v43 }
 0x1d4   : > { %2889 = vtanh.f32 %v1069_v45  ;;  %v1072_v49 = vpop.f32.mrb[28].mxu0  ;;  %1316 = vmatmul.mubr.f32.gmra.mrb[20].mxu1 %v2880_v48 }
 0x1d5   : > { %2891 = vtanh.f32 %v1067_v39  ;;  %v1073_v46 = vadd.f32 %v1072_v49, %v3798_v11  ;;  %v1074_v47 = vpop.f32.mrb[29].mxu0  ;;  %2737 = vmatpush1.bf16.msra.mxu1 %v3784_v61 }
 0x1d6   : > { %v2882_v51 = vpop.eup %2881  ;;  %v1075_v52 = vadd.f32 %v1074_v47, %v3801_v12  ;;  %2722 = vmatprep.subr.bf16.mxu1 %v3787_v62 }
 0x1d7   : > { %v2884_v55 = vpop.eup %2883  ;;  %1321 = vmatprep.mubr.f32.mxu1 %v2882_v51 }
 0x1d8   : > { %2893 = vtanh.f32 %v1075_v52  ;;  %v1078_v56 = vpop.f32.mrb[30].mxu0  ;;  %1322 = vmatmul.mubr.f32.gmra.mrb[22].mxu1 %v2884_v55 }
 0x1d9   : > { %2895 = vtanh.f32 %v1073_v46  ;;  %v1079_v53 = vadd.f32 %v1078_v56, %v3798_v11  ;;  %v1080_v63 = vpop.f32.mrb[31].mxu0  ;;  %2738 = vmatpush1.bf16.msra.mxu1 %v3790_v4  ;;  %v1433_v4 = vld [vmem:[#allocation2 + $0x188] sm:$0xff] }
 0x1da   : > { %v2886_v0 = vpop.eup %2885  ;;  %v1081_v54 = vadd.f32 %v1080_v63, %v3801_v12  ;;  %v2655_v12 = vpack.c.bf16 %v1435_v10, %v1433_v4 }
 0x1db   : > { %v2888_v61 = vpop.eup %2887  ;;  %1327 = vmatprep.mubr.f32.mxu1 %v2886_v0 }
 0x1dc   : > { %2897 = vtanh.f32 %v1081_v54  ;;  %1328 = vmatmul.mubr.f32.gmra.mrb[24].mxu1 %v2888_v61  ;;  %2656 = vmatprep.subr.bf16.mxu0 %v2655_v12 }
 0x1dd   : > { %2899 = vtanh.f32 %v1079_v53  ;;  %2723 = vmatprep.subr.bf16.mxu1 %v2655_v12  ;;  %2658 = vmatpush1.bf16.msra.mxu0 %v2657_v2 }
 0x1de   : > { %v2890_v62 = vpop.eup %2889  ;;  %2739 = vmatpush1.bf16.msra.mxu1 %v2657_v2  ;;  %2660 = vmatprep.subr.bf16.mxu0 %v2659_v16 }
 0x1df   : > { %v2892_v57 = vpop.eup %2891  ;;  %1333 = vmatprep.mubr.f32.mxu1 %v2890_v62  ;;  %2724 = vmatprep.subr.bf16.mxu1 %v2659_v16 }
 0x1e0   : > { %1334 = vmatmul.mubr.f32.gmra.mrb[26].mxu1 %v2892_v57 }
 0x1e1   : > { %2662 = vmatpush1.bf16.msra.mxu0 %v2661_v17 }
 0x1e2   : > { %v2894_v58 = vpop.eup %2893  ;;  %2740 = vmatpush1.bf16.msra.mxu1 %v2661_v17  ;;  %2664 = vmatprep.subr.bf16.mxu0 %v2663_v7 }
 0x1e3   : > { %v2896_v59 = vpop.eup %2895  ;;  %1339 = vmatprep.mubr.f32.mxu1 %v2894_v58  ;;  %2725 = vmatprep.subr.bf16.mxu1 %v2663_v7 }
 0x1e4   : > { %1340 = vmatmul.mubr.f32.gmra.mrb[28].mxu1 %v2896_v59 }
 0x1e5   : > { %2666 = vmatpush1.bf16.msra.mxu0 %v2665_v23 }
 0x1e6   : > { %v2898_v11 = vpop.eup %2897  ;;  %2741 = vmatpush1.bf16.msra.mxu1 %v2665_v23  ;;  %2668 = vmatprep.subr.bf16.mxu0 %v2667_v8 }
 0x1e7   : > { %v2900_v6 = vpop.eup %2899  ;;  %1345 = vmatprep.mubr.f32.mxu1 %v2898_v11  ;;  %2726 = vmatprep.subr.bf16.mxu1 %v2667_v8 }
 0x1e8   : > { %1346 = vmatmul.mubr.f32.gmra.mrb[30].mxu1 %v2900_v6 }
 0x1e9   : > { %2670 = vmatpush1.bf16.msra.mxu0 %v2669_v20 }
 0x1ea   : > { %2742 = vmatpush1.bf16.msra.mxu1 %v2669_v20 }
 0x1eb   : > { %2672 = vmatprep.subr.bf16.mxu1 %v2671_v31 }
 0x27f   : > { %v1257_v32 = vpop.f32.mrb[0].mxu1 }
 0x280   : > { %v1258_v35 = vadd.f32 %v1257_v32, %v3868_v29  ;;  %v1259_v36 = vpop.f32.mrb[1].mxu1 }
 0x281   : > { %v1260_v33 = vadd.f32 %v1259_v36, %v3871_v19 }
 0x283   : > { %2901 = vtanh.f32 %v1260_v33  ;;  %v1263_v34 = vpop.f32.mrb[2].mxu1 }
 0x284   : > { %2903 = vtanh.f32 %v1258_v35  ;;  %v1264_v37 = vadd.f32 %v1263_v34, %v3868_v29  ;;  %v1265_v38 = vpop.f32.mrb[3].mxu1 }
 0x285   : > { %v1266_v41 = vadd.f32 %v1265_v38, %v3871_v19 }
 0x287   : > { %2905 = vtanh.f32 %v1266_v41  ;;  %v1269_v42 = vpop.f32.mrb[4].mxu1 }
 0x288   : > { %2907 = vtanh.f32 %v1264_v37  ;;  %v1270_v39 = vadd.f32 %v1269_v42, %v3868_v29  ;;  %v1271_v40 = vpop.f32.mrb[5].mxu1 }
 0x289   : > { %v1272_v43 = vadd.f32 %v1271_v40, %v3871_v19 }
 0x28b   : > { %2909 = vtanh.f32 %v1272_v43  ;;  %v1275_v45 = vpop.f32.mrb[6].mxu1 }
 0x28c   : > { %2911 = vtanh.f32 %v1270_v39  ;;  %v1276_v48 = vadd.f32 %v1275_v45, %v3868_v29  ;;  %v1277_v49 = vpop.f32.mrb[7].mxu1 }
 0x28d   : > { %v2902_v46 = vpop.eup %2901  ;;  %v1278_v47 = vadd.f32 %v1277_v49, %v3871_v19 }
 0x28e   : > { %v2904_v51 = vpop.eup %2903  ;;  %1524 = vmatprep.mubr.f32.mxu0 %v2902_v46 }
 0x28f   : > { %2913 = vtanh.f32 %v1278_v47  ;;  %v1281_v52 = vpop.f32.mrb[8].mxu1  ;;  %1525 = vmatmul.mubr.f32.vlgmr.msra.gmra.mrb[32].mxu0 %v2904_v51 }
 0x290   : > { %2915 = vtanh.f32 %v1276_v48  ;;  %v1282_v55 = vadd.f32 %v1281_v52, %v3868_v29  ;;  %v1283_v56 = vpop.f32.mrb[9].mxu1 }
 0x291   : > { %v2906_v53 = vpop.eup %2905  ;;  %v1284_v63 = vadd.f32 %v1283_v56, %v3871_v19 }
 0x292   : > { %v2908_v0 = vpop.eup %2907  ;;  %1530 = vmatprep.mubr.f32.mxu0 %v2906_v53 }
 0x293   : > { %2917 = vtanh.f32 %v1284_v63  ;;  %v1287_v54 = vpop.f32.mrb[10].mxu1  ;;  %1531 = vmatmul.mubr.f32.gmra.mrb[34].mxu0 %v2908_v0  ;;  %v1653_v0 = vld [vmem:[%s4203_s3] sm:$0xff] }
 0x294   : > { %2919 = vtanh.f32 %v1282_v55  ;;  %v1288_v61 = vadd.f32 %v1287_v54, %v3868_v29  ;;  %v1289_v62 = vpop.f32.mrb[11].mxu1  ;;  %v1655_v54 = vld [vmem:[%s4203_s3 + $0x10] sm:$0xff] }
 0x295   : > { %v2910_v57 = vpop.eup %2909  ;;  %v1290_v58 = vadd.f32 %v1289_v62, %v3871_v19  ;;  %v1658_v62 = vld [vmem:[%s4203_s3 + $0x28] sm:$0xff] }
 0x296   : > { %v2912_v59 = vpop.eup %2911  ;;  %1536 = vmatprep.mubr.f32.mxu0 %v2910_v57  ;;  %v1660_v57 = vld [vmem:[%s4203_s3 + $0x38] sm:$0xff] }
 0x297   : > { %2921 = vtanh.f32 %v1290_v58  ;;  %v1293_v11 = vpop.f32.mrb[12].mxu1  ;;  %1537 = vmatmul.mubr.f32.gmra.mrb[36].mxu0 %v2912_v59 }
 0x298   : > { %2923 = vtanh.f32 %v1288_v61  ;;  %v1294_v6 = vadd.f32 %v1293_v11, %v3868_v29  ;;  %v1295_v4 = vpop.f32.mrb[13].mxu1 }
 0x299   : > { %v2914_v10 = vpop.eup %2913  ;;  %v1296_v12 = vadd.f32 %v1295_v4, %v3871_v19 }
 0x29a   : > { %v2916_v60 = vpop.eup %2915  ;;  %1542 = vmatprep.mubr.f32.mxu0 %v2914_v10 }
 0x29b   : > { %2925 = vtanh.f32 %v1296_v12  ;;  %v1299_v1 = vpop.f32.mrb[14].mxu1  ;;  %1543 = vmatmul.mubr.f32.gmra.mrb[38].mxu0 %v2916_v60  ;;  %v2675_v12 = vpack.c.bf16 %v1660_v57, %v1658_v62  ;;  %v1657_v60 = vld [vmem:[%s4203_s3 + $0x20] sm:$0xff] }
 0x29c   : > { %2927 = vtanh.f32 %v1294_v6  ;;  %v1300_v2 = vadd.f32 %v1299_v1, %v3868_v29  ;;  %v1301_v5 = vpop.f32.mrb[15].mxu1  ;;  %v2673_v6 = vpack.c.bf16 %v1655_v54, %v1653_v0  ;;  %v1659_v1 = vld [vmem:[%s4203_s3 + $0x30] sm:$0xff] }
 0x29d   : > { %v2918_v15 = vpop.eup %2917  ;;  %v1302_v16 = vadd.f32 %v1301_v5, %v3871_v19  ;;  %v1664_v5 = vld [vmem:[%s4203_s3 + $0x58] sm:$0xff] }
 0x29e   : > { %v2920_v13 = vpop.eup %2919  ;;  %1548 = vmatprep.mubr.f32.mxu0 %v2918_v15 }
 0x29f   : > { %2929 = vtanh.f32 %v1302_v16  ;;  %v1305_v14 = vpop.f32.mrb[16].mxu1  ;;  %1549 = vmatmul.mubr.f32.gmra.mrb[40].mxu0 %v2920_v13  ;;  %v1661_v13 = vld [vmem:[%s4203_s3 + $0x40] sm:$0xff] }
 0x2a0   : > { %2931 = vtanh.f32 %v1300_v2  ;;  %v1306_v17 = vadd.f32 %v1305_v14, %v3868_v29  ;;  %v1307_v18 = vpop.f32.mrb[17].mxu1  ;;  %v1663_v14 = vld [vmem:[%s4203_s3 + $0x50] sm:$0xff] }
 0x2a1   : > { %v2922_v22 = vpop.eup %2921  ;;  %v1308_v7 = vadd.f32 %v1307_v18, %v3871_v19  ;;  %v2681_v18 = vpack.c.bf16 %v1663_v14, %v1661_v13 }
 0x2a2   : > { %v2924_v21 = vpop.eup %2923  ;;  %1554 = vmatprep.mubr.f32.mxu0 %v2922_v22 }
 0x2a3   : > { %2933 = vtanh.f32 %v1308_v7  ;;  %v1311_v9 = vpop.f32.mrb[18].mxu1  ;;  %1555 = vmatmul.mubr.f32.gmra.mrb[42].mxu0 %v2924_v21 }
 0x2a4   : > { %2935 = vtanh.f32 %v1306_v17  ;;  %v1312_v23 = vadd.f32 %v1311_v9, %v3868_v29  ;;  %v1313_v24 = vpop.f32.mrb[19].mxu1 }
 0x2a5   : > { %v2926_v3 = vpop.eup %2925  ;;  %v1314_v8 = vadd.f32 %v1313_v24, %v3871_v19  ;;  %v3942_v24 = vld [vmem:[%s3939_s19] sm:$0xff] }
 0x2a6   : > { %v2928_v25 = vpop.eup %2927  ;;  %1560 = vmatprep.mubr.f32.mxu0 %v2926_v3  ;;  %v3947_v3 = vld [vmem:[%s3939_s19 + $0x8] sm:$0xff] }
 0x2a7   : > { %2937 = vtanh.f32 %v1314_v8  ;;  %v1317_v26 = vpop.f32.mrb[20].mxu1  ;;  %1561 = vmatmul.mubr.f32.gmra.mrb[44].mxu0 %v2928_v25  ;;  %v3952_v8 = vld [vmem:[%s3939_s19 + $0x10] sm:$0xff]  ;;  %v3957_v25 = vld [vmem:[%s3939_s19 + $0x18] sm:$0xff] }
 0x2a8   : > { %2939 = vtanh.f32 %v1312_v23  ;;  %v1318_v20 = vadd.f32 %v1317_v26, %v3868_v29  ;;  %v1319_v27 = vpop.f32.mrb[21].mxu1  ;;  %v3074_v23 = vmov 0.0   ;;  %v3962_v26 = vld [vmem:[%s3939_s19 + $0x20] sm:$0xff] }
 0x2a9   : > { %v2930_v30 = vpop.eup %2929  ;;  %v1320_v31 = vadd.f32 %v1319_v27, %v3871_v19  ;;  %v3972_v27 = vld [vmem:[%s3939_s19 + $0x30] sm:$0xff] }
 0x2aa   : > { %v2932_v28 = vpop.eup %2931  ;;  %1566 = vmatprep.mubr.f32.mxu0 %v2930_v30  ;;  %v3977_v30 = vld [vmem:[%s3939_s19 + $0x38] sm:$0xff] }
 0x2ab   : > { %2941 = vtanh.f32 %v1320_v31  ;;  %v1323_v32 = vpop.f32.mrb[22].mxu1  ;;  %1567 = vmatmul.mubr.f32.gmra.mrb[46].mxu0 %v2932_v28  ;;  %v3982_v31 = vld [vmem:[%s3939_s19 + $0x40] sm:$0xff]  ;;  %v463_v28 = vld [vmem:[%s3939_s19 + $0x48] sm:$0xff] }
 0x2ac   : > { %2943 = vtanh.f32 %v1318_v20  ;;  %v1324_v35 = vadd.f32 %v1323_v32, %v3868_v29  ;;  %v1325_v36 = vpop.f32.mrb[23].mxu1  ;;  %v3967_v20 = vld [vmem:[%s3939_s19 + $0x28] sm:$0xff]  ;;  %v464_v32 = vld [vmem:[%s3939_s19 + $0x50] sm:$0xff] }
 0x2ad   : > { %v2934_v33 = vpop.eup %2933  ;;  %v1326_v34 = vadd.f32 %v1325_v36, %v3871_v19  ;;  %v3075_v36 = vmov 1.0|1.0  }
 0x2ae   : > { %v2936_v37 = vpop.eup %2935  ;;  %1572 = vmatprep.mubr.f32.mxu0 %v2934_v33  ;;  %2683 = vmatprep.subr.bf16.mxu0 %v3075_v36  ;;  %v466_v33 = vld [vmem:[%s3939_s19 + $0x60] sm:$0xff] }
 0x2af   : > { %2945 = vtanh.f32 %v1326_v34  ;;  %v1329_v38 = vpop.f32.mrb[24].mxu1  ;;  %1573 = vmatmul.mubr.f32.gmra.mrb[48].mxu0 %v2936_v37  ;;  %v467_v34 = vld [vmem:[%s3939_s19 + $0x68] sm:$0xff]  ;;  %v468_v37 = vld [vmem:[%s3939_s19 + $0x70] sm:$0xff] }
 0x2b0   : > { %2947 = vtanh.f32 %v1324_v35  ;;  %v1330_v41 = vadd.f32 %v1329_v38, %v3868_v29  ;;  %v1331_v42 = vpop.f32.mrb[25].mxu1  ;;  %v465_v35 = vld [vmem:[%s3939_s19 + $0x58] sm:$0xff]  ;;  %2684 = vmatpush3.bf16.msra.mxu0 %v3075_v36 }
 0x2b1   : > { %v2938_v39 = vpop.eup %2937  ;;  %v1332_v40 = vadd.f32 %v1331_v42, %v3871_v19  ;;  %2685 = vmatprep.subr.bf16.mxu0 %v3075_v36  ;;  %v469_v38 = vld [vmem:[%s3939_s19 + $0x78] sm:$0xff]  ;;  %v487_v42 = vld [vmem:[%s4202_s2 + $0x8] sm:$0xff] }
 0x2b2   : > { %v2940_v43 = vpop.eup %2939  ;;  %1578 = vmatprep.mubr.f32.mxu0 %v2938_v39 }
 0x2b3   : > { %2949 = vtanh.f32 %v1332_v40  ;;  %v1335_v45 = vpop.f32.mrb[26].mxu1  ;;  %1579 = vmatmul.mubr.f32.gmra.mrb[50].mxu0 %v2940_v43  ;;  %v488_v40 = vld [vmem:[%s4202_s2 + $0x10] sm:$0xff]  ;;  %v489_v43 = vld [vmem:[%s4202_s2 + $0x18] sm:$0xff] }
 0x2b4   : > { %2951 = vtanh.f32 %v1330_v41  ;;  %v1336_v48 = vadd.f32 %v1335_v45, %v3868_v29  ;;  %v1337_v49 = vpop.f32.mrb[27].mxu1  ;;  %2686 = vmatpush3.bf16.msra.mxu0 %v3075_v36  ;;  %v486_v41 = vld [vmem:[%s4202_s2] sm:$0xff]  ;;  %v2703_v45 = vpack.c.bf16 %v489_v43, %v488_v40 }
 0x2b5   : > { %v2942_v46 = vpop.eup %2941  ;;  %v1338_v47 = vadd.f32 %v1337_v49, %v3871_v19  ;;  %2687 = vmatprep.subr.bf16.mxu0 %v3075_v36  ;;  %v2699_v39 = vpack.c.bf16 %v487_v42, %v486_v41  ;;  %v491_v49 = vld [vmem:[%s4202_s2 + $0x28] sm:$0xff] }
 0x2b6   : > { %v2944_v51 = vpop.eup %2943  ;;  %1584 = vmatprep.mubr.f32.mxu0 %v2942_v46 }
 0x2b7   : > { %2953 = vtanh.f32 %v1338_v47  ;;  %v1341_v52 = vpop.f32.mrb[28].mxu1  ;;  %1585 = vmatmul.mubr.f32.gmra.mrb[52].mxu0 %v2944_v51 }
 0x2b8   : > { %2955 = vtanh.f32 %v1336_v48  ;;  %v1342_v55 = vadd.f32 %v1341_v52, %v3868_v29  ;;  %v1343_v56 = vpop.f32.mrb[29].mxu1  ;;  %2688 = vmatpush3.bf16.msra.mxu0 %v3075_v36  ;;  %v490_v48 = vld [vmem:[%s4202_s2 + $0x20] sm:$0xff] }
 0x2b9   : > { %v2946_v53 = vpop.eup %2945  ;;  %v1344_v63 = vadd.f32 %v1343_v56, %v3871_v19  ;;  %2689 = vmatprep.subr.bf16.mxu0 %v3075_v36  ;;  %v2707_v46 = vpack.c.bf16 %v491_v49, %v490_v48 }
 0x2ba   : > { %v2948_v61 = vpop.eup %2947  ;;  %1590 = vmatprep.mubr.f32.mxu0 %v2946_v53 }
 0x2bb   : > { %2957 = vtanh.f32 %v1344_v63  ;;  %v1347_v58 = vpop.f32.mrb[30].mxu1  ;;  %1591 = vmatmul.mubr.f32.gmra.mrb[54].mxu0 %v2948_v61 }
 0x2bc   : > { %2959 = vtanh.f32 %v1342_v55  ;;  %v1348_v59 = vadd.f32 %v1347_v58, %v3868_v29  ;;  %v1349_v11 = vpop.f32.mrb[31].mxu1  ;;  %v1662_v29 = vld [vmem:[%s4203_s3 + $0x48] sm:$0xff]  ;;  %2690 = vmatpush3.bf16.msra.mxu0 %v3075_v36 }
 0x2bd   : > { %v2950_v4 = vpop.eup %2949  ;;  %v1350_v10 = vadd.f32 %v1349_v11, %v3871_v19  ;;  %v2677_v19 = vpack.c.bf16 %v1659_v1, %v1657_v60  ;;  %v2679_v16 = vpack.c.bf16 %v1664_v5, %v1662_v29  ;;  %2691 = vmatprep.subr.bf16.mxu0 %v3075_v36  ;;  %v1448_v29 = vld [vmem:[%s4211_s11] sm:$0x3] }
 0x2be   : > { %v2952_v2 = vpop.eup %2951  ;;  %1596 = vmatprep.mubr.f32.mxu1 %v2950_v4 }
 0x2bf   : > { %2961 = vtanh.f32 %v1350_v10  ;;  %1597 = vmatmul.mubr.f32.vlgmr.msra.gmra.mrb[32].mxu1 %v2952_v2 }
 0x2c0   : > { %2963 = vtanh.f32 %v1348_v59  ;;  %2674 = vmatpush1.bf16.msra.mxu1 %v2673_v6  ;;  %2692 = vmatpush3.bf16.msra.mxu0 %v3075_v36 }
 0x2c1   : > { %v2954_v15 = vpop.eup %2953  ;;  %2676 = vmatprep.subr.bf16.mxu1 %v2675_v12  ;;  %2693 = vmatprep.subr.bf16.mxu0 %v3075_v36 }
 0x2c2   : > { %v2956_v17 = vpop.eup %2955  ;;  %1602 = vmatprep.mubr.f32.mxu1 %v2954_v15  ;;  %v4071_v15 = vrot.slane %v1448_v29, %v3521_v44 }
 0x2c3   : > { %1603 = vmatmul.mubr.f32.gmra.mrb[34].mxu1 %v2956_v17 }
 0x2c4   : > { %2678 = vmatpush1.bf16.msra.mxu1 %v2677_v19  ;;  %2694 = vmatpush3.bf16.msra.mxu0 %v3075_v36 }
 0x2c5   : > { %v2958_v22 = vpop.eup %2957  ;;  %2680 = vmatprep.subr.bf16.mxu1 %v2679_v16  ;;  %2695 = vmatprep.subr.bf16.mxu0 %v3075_v36  ;;  %v4074_v16 = vrot.slane %v1448_v29, %v3532_v50 }
 0x2c6   : > { %v2960_v7 = vpop.eup %2959  ;;  %1608 = vmatprep.mubr.f32.mxu1 %v2958_v22 }
 0x2c7   : > { %1609 = vmatmul.mubr.f32.gmra.mrb[36].mxu1 %v2960_v7 }
 0x2c8   : > { %2682 = vmatpush1.bf16.msra.mxu1 %v2681_v18  ;;  %2696 = vmatpush3.bf16.msra.mxu0 %v3075_v36 }
 0x2c9   : > { %v2962_v21 = vpop.eup %2961  ;;  %2700 = vmatprep.subr.bf16.mxu1 %v2699_v39  ;;  %2697 = vmatprep.subr.bf16.mxu0 %v3075_v36 }
 0x2ca   : > { %v2964_v9 = vpop.eup %2963  ;;  %1614 = vmatprep.mubr.f32.mxu1 %v2962_v21 }
 0x2cb   : > { %1615 = vmatmul.mubr.f32.gmra.mrb[38].mxu1 %v2964_v9 }
 0x2cc   : > { %1778 = vmatprep.mubr.f32.mxu1 %v3074_v23  ;;  %2698 = vmatpush3.bf16.msra.mxu0 %v3075_v36 }
 0x2cf   : > { %2307 = vmatmul.mubr.msk.f32.vlgmr.msra.gmra.mrb[40].mxu1 %vm1665_vm0, %v3942_v24 }
 0x2d0   : > { %1784 = vmatprep.mubr.f32.mxu1 %v3074_v23  ;;  %2702 = vmatpush3.bf16.msra.mxu1 %v2699_v39 }
 0x2d1   : > { %2704 = vmatprep.subr.bf16.mxu1 %v2703_v45 }
 0x2d3   : > { %2308 = vmatmul.mubr.msk.f32.gmra.mrb[42].mxu1 %vm1665_vm0, %v3947_v3 }
 0x2d4   : > { %1790 = vmatprep.mubr.f32.mxu1 %v3074_v23  ;;  %2706 = vmatpush3.bf16.msra.mxu1 %v2703_v45 }
 0x2d5   : > { %2708 = vmatprep.subr.bf16.mxu1 %v2707_v46 }
 0x2d7   : > { %2309 = vmatmul.mubr.msk.f32.gmra.mrb[44].mxu1 %vm1665_vm0, %v3952_v8 }
 0x2d8   : > { %1796 = vmatprep.mubr.f32.mxu1 %v3074_v23  ;;  %2710 = vmatpush3.bf16.msra.mxu1 %v2707_v46 }
 0x2db   : > { %2310 = vmatmul.mubr.msk.f32.gmra.mrb[46].mxu1 %vm1665_vm0, %v3957_v25 }
 0x2dc   : > { %1802 = vmatprep.mubr.f32.mxu1 %v3074_v23 }
 0x2df   : > { %2311 = vmatmul.mubr.msk.f32.gmra.mrb[48].mxu1 %vm1665_vm0, %v3962_v26 }
 0x2e0   : > { %1808 = vmatprep.mubr.f32.mxu1 %v3074_v23 }
 0x2e3   : > { %2312 = vmatmul.mubr.msk.f32.gmra.mrb[50].mxu1 %vm1665_vm0, %v3967_v20 }
 0x2e4   : > { %1814 = vmatprep.mubr.f32.mxu1 %v3074_v23 }
 0x2e7   : > { %2313 = vmatmul.mubr.msk.f32.gmra.mrb[52].mxu1 %vm1665_vm0, %v3972_v27 }
 0x2e8   : > { %1820 = vmatprep.mubr.f32.mxu1 %v3074_v23 }
 0x2eb   : > { %2314 = vmatmul.mubr.msk.f32.gmra.mrb[54].mxu1 %vm1665_vm0, %v3977_v30 }
 0x2ec   : > { %1826 = vmatprep.mubr.f32.mxu1 %v3074_v23 }
 0x2ef   : > { %2315 = vmatmul.mubr.msk.f32.gmra.mrb[56].mxu1 %vm1665_vm0, %v3982_v31 }
 0x2f0   : > { %1832 = vmatprep.mubr.f32.mxu1 %v3074_v23 }
 0x2f3   : > { %2316 = vmatmul.mubr.msk.f32.gmra.mrb[58].mxu1 %vm1665_vm0, %v463_v28 }
 0x2f4   : > { %1838 = vmatprep.mubr.f32.mxu1 %v3074_v23 }
 0x2f7   : > { %2317 = vmatmul.mubr.msk.f32.gmra.mrb[60].mxu1 %vm1665_vm0, %v464_v32 }
 0x2f8   : > { %1844 = vmatprep.mubr.f32.mxu1 %v3074_v23 }
 0x2fb   : > { %2318 = vmatmul.mubr.msk.f32.gmra.mrb[62].mxu1 %vm1665_vm0, %v465_v35 }
 0x2fc   : > { %1850 = vmatprep.mubr.f32.mxu1 %v3074_v23 }
 0x2ff   : > { %2319 = vmatmul.mubr.msk.f32.gmra.mrb[64].mxu1 %vm1665_vm0, %v466_v33 }
 0x300   : > { %1856 = vmatprep.mubr.f32.mxu1 %v3074_v23 }
 0x303   : > { %2320 = vmatmul.mubr.msk.f32.gmra.mrb[66].mxu1 %vm1665_vm0, %v467_v34 }
 0x304   : > { %1862 = vmatprep.mubr.f32.mxu1 %v3074_v23 }
 0x307   : > { %2321 = vmatmul.mubr.msk.f32.gmra.mrb[68].mxu1 %vm1665_vm0, %v468_v37 }
 0x308   : > { %1868 = vmatprep.mubr.f32.mxu1 %v3074_v23 }
 0x30b   : > { %2322 = vmatmul.mubr.msk.f32.gmra.mrb[70].mxu1 %vm1665_vm0, %v469_v38 }
 0x30c   : > { %2455 = vmatprep.mubr.msk.f32.mxu1 %vm1665_vm0, %v3942_v24 }
 0x30f   : > { %2456 = vmatmul.mubr.msk.f32.vlgmr.msra.gmra.mrb[72].mxu1 %vm1665_vm0, %v3947_v3 }
 0x310   : > { %2458 = vmatprep.mubr.msk.f32.mxu1 %vm1665_vm0, %v3952_v8 }
 0x313   : > { %2459 = vmatmul.mubr.msk.f32.gmra.mrb[74].mxu1 %vm1665_vm0, %v3957_v25 }
 0x314   : > { %2461 = vmatprep.mubr.msk.f32.mxu1 %vm1665_vm0, %v3962_v26 }
 0x317   : > { %2462 = vmatmul.mubr.msk.f32.gmra.mrb[76].mxu1 %vm1665_vm0, %v3967_v20 }
 0x318   : > { %2464 = vmatprep.mubr.msk.f32.mxu1 %vm1665_vm0, %v3972_v27 }
 0x31b   : > { %2465 = vmatmul.mubr.msk.f32.gmra.mrb[78].mxu1 %vm1665_vm0, %v3977_v30 }
 0x31c   : > { %2467 = vmatprep.mubr.msk.f32.mxu1 %vm1665_vm0, %v3982_v31 }
 0x31f   : > { %2468 = vmatmul.mubr.msk.f32.gmra.mrb[80].mxu1 %vm1665_vm0, %v463_v28 }
 0x320   : > { %2470 = vmatprep.mubr.msk.f32.mxu1 %vm1665_vm0, %v464_v32 }
 0x323   : > { %2471 = vmatmul.mubr.msk.f32.gmra.mrb[82].mxu1 %vm1665_vm0, %v465_v35 }
 0x324   : > { %2473 = vmatprep.mubr.msk.f32.mxu1 %vm1665_vm0, %v466_v33 }
 0x327   : > { %2474 = vmatmul.mubr.msk.f32.gmra.mrb[84].mxu1 %vm1665_vm0, %v467_v34 }
 0x328   : > { %2476 = vmatprep.mubr.msk.f32.mxu1 %vm1665_vm0, %v468_v37 }
 0x32b   : > { %2477 = vmatmul.mubr.msk.f32.gmra.mrb[86].mxu1 %vm1665_vm0, %v469_v38 }
 0x362   : > { %v1526_v47 = vpop.f32.mrb[32].mxu0 }
 0x363   : > { %v1528_v51 = vpop.f32.mrb[33].mxu0  ;;  %v1527_v17 = vadd.f32 %v1526_v47, %v4071_v15 }
 0x364   : > { %v1529_v18 = vadd.f32 %v1528_v51, %v4074_v16 }
 0x365   : > { %2965 = vtanh.f32 %v1527_v17 }
 0x366   : > { %v1532_v52 = vpop.f32.mrb[34].mxu0  ;;  %2967 = vtanh.f32 %v1529_v18 }
 0x367   : > { %v1534_v55 = vpop.f32.mrb[35].mxu0  ;;  %v1533_v21 = vadd.f32 %v1532_v52, %v4071_v15 }
 0x368   : > { %v1535_v44 = vadd.f32 %v1534_v55, %v4074_v16 }
 0x369   : > { %2969 = vtanh.f32 %v1533_v21 }
 0x36a   : > { %v1538_v56 = vpop.f32.mrb[36].mxu0  ;;  %2971 = vtanh.f32 %v1535_v44 }
 0x36b   : > { %v1540_v53 = vpop.f32.mrb[37].mxu0  ;;  %v1539_v23 = vadd.f32 %v1538_v56, %v4071_v15 }
 0x36c   : > { %v1541_v24 = vadd.f32 %v1540_v53, %v4074_v16 }
 0x36d   : > { %2973 = vtanh.f32 %v1539_v23 }
 0x36e   : > { %v1544_v63 = vpop.f32.mrb[38].mxu0  ;;  %2975 = vtanh.f32 %v1541_v24 }
 0x36f   : > { %v1546_v0 = vpop.f32.mrb[39].mxu0  ;;  %v1545_v25 = vadd.f32 %v1544_v63, %v4071_v15  ;;  %v2966_v20 = vpop.eup %2965 }
 0x370   : > { %v1547_v26 = vadd.f32 %v1546_v0, %v4074_v16  ;;  %v2968_v30 = vpop.eup %2967 }
 0x371   : > { %2977 = vtanh.f32 %v1545_v25 }
 0x372   : > { %v1550_v54 = vpop.f32.mrb[40].mxu0  ;;  %2979 = vtanh.f32 %v1547_v26 }
 0x373   : > { %v1552_v61 = vpop.f32.mrb[41].mxu0  ;;  %v1551_v32 = vadd.f32 %v1550_v54, %v4071_v15  ;;  %v2970_v33 = vpop.eup %2969 }
 0x374   : > { %v1553_v36 = vadd.f32 %v1552_v61, %v4074_v16  ;;  %v2972_v37 = vpop.eup %2971 }
 0x375   : > { %2981 = vtanh.f32 %v1551_v32 }
 0x376   : > { %v1556_v62 = vpop.f32.mrb[42].mxu0  ;;  %2983 = vtanh.f32 %v1553_v36 }
 0x377   : > { %v1558_v57 = vpop.f32.mrb[43].mxu0  ;;  %v1557_v42 = vadd.f32 %v1556_v62, %v4071_v15  ;;  %v2974_v43 = vpop.eup %2973 }
 0x378   : > { %v1559_v40 = vadd.f32 %v1558_v57, %v4074_v16  ;;  %v2976_v48 = vpop.eup %2975 }
 0x379   : > { %2985 = vtanh.f32 %v1557_v42 }
 0x37a   : > { %v4043_v58 = vpop.f32.mrb[44].mxu0  ;;  %2987 = vtanh.f32 %v1559_v40 }
 0x37b   : > { %v4045_v59 = vpop.f32.mrb[45].mxu0  ;;  %v1563_v47 = vadd.f32 %v4043_v58, %v4071_v15  ;;  %v2978_v55 = vpop.eup %2977 }
 0x37c   : > { %v1565_v52 = vadd.f32 %v4045_v59, %v4074_v16  ;;  %v2980_v53 = vpop.eup %2979 }
 0x37d   : > { %2989 = vtanh.f32 %v1563_v47 }
 0x37e   : > { %v4047_v11 = vpop.f32.mrb[46].mxu0  ;;  %2991 = vtanh.f32 %v1565_v52 }
 0x37f   : > { %v4049_v6 = vpop.f32.mrb[47].mxu0  ;;  %v1569_v54 = vadd.f32 %v4047_v11, %v4071_v15  ;;  %v2982_v57 = vpop.eup %2981 }
 0x380   : > { %v1571_v62 = vadd.f32 %v4049_v6, %v4074_v16  ;;  %v2984_v59 = vpop.eup %2983 }
 0x381   : > { %2993 = vtanh.f32 %v1569_v54 }
 0x382   : > { %v4051_v4 = vpop.f32.mrb[48].mxu0  ;;  %2995 = vtanh.f32 %v1571_v62 }
 0x383   : > { %v4053_v10 = vpop.f32.mrb[49].mxu0  ;;  %v1575_v18 = vadd.f32 %v4051_v4, %v4071_v15  ;;  %v2986_v44 = vpop.eup %2985 }
 0x384   : > { %v1577_v11 = vadd.f32 %v4053_v10, %v4074_v16  ;;  %v2988_v6 = vpop.eup %2987 }
 0x385   : > { %2997 = vtanh.f32 %v1575_v18 }
 0x386   : > { %v4055_v12 = vpop.f32.mrb[50].mxu0  ;;  %2999 = vtanh.f32 %v1577_v11 }
 0x387   : > { %v4057_v60 = vpop.f32.mrb[51].mxu0  ;;  %v1581_v26 = vadd.f32 %v4055_v12, %v4071_v15 }
 0x388   : > { %v1583_v4 = vadd.f32 %v4057_v60, %v4074_v16 }
 0x389   : > { %3001 = vtanh.f32 %v1581_v26 }
 0x38a   : > { %v4059_v1 = vpop.f32.mrb[52].mxu0  ;;  %3003 = vtanh.f32 %v1583_v4 }
 0x38b   : > { %v4061_v2 = vpop.f32.mrb[53].mxu0  ;;  %v1587_v32 = vadd.f32 %v4059_v1, %v4071_v15 }
 0x38c   : > { %v1589_v12 = vadd.f32 %v4061_v2, %v4074_v16 }
 0x38d   : > { %3005 = vtanh.f32 %v1587_v32 }
 0x38e   : > { %v4066_v5 = vpop.f32.mrb[54].mxu0  ;;  %3007 = vtanh.f32 %v1589_v12 }
 0x38f   : > { %v4068_v19 = vpop.f32.mrb[55].mxu0 }
 0x390   : > { %v1595_v1 = vadd.f32 %v4068_v19, %v4074_v16 }
 0x392   : > { %v4076_v13 = vpop.f32.mrb[32].mxu1 }
 0x393   : > { %v4078_v14 = vpop.f32.mrb[33].mxu1 }
 0x396   : > { %v4082_v22 = vpop.f32.mrb[34].mxu1 }
 0x397   : > { %v4084_v7 = vpop.f32.mrb[35].mxu1  ;;  %v1605_v52 = vadd.f32 %v4082_v22, %v4071_v15 }
 0x39a   : > { %v4088_v50 = vpop.f32.mrb[36].mxu1 }
 0x39b   : > { %v4090_v9 = vpop.f32.mrb[37].mxu1  ;;  %v1611_v54 = vadd.f32 %v4088_v50, %v4071_v15 }
 0x39c   : > { %v1613_v22 = vadd.f32 %v4090_v9, %v4074_v16 }
 0x39e   : > { %v4094_v3 = vpop.f32.mrb[38].mxu1 }
 0x39f   : > { %v4096_v8 = vpop.f32.mrb[39].mxu1 }
 0x3a0   : > { %v1619_v50 = vadd.f32 %v4096_v8, %v4074_v16 }
 0x3a2   : > { %v1780_v27 = vpop.f32.mrb[40].mxu1 }
 0x3a3   : > { %v1875_v31 = vmul.f32 %v2966_v20, %v1780_v27  ;;  %v1782_v28 = vpop.f32.mrb[41].mxu1  ;;  %v2990_v27 = vpop.eup %2989 }
 0x3a4   : > { %v1876_v35 = vmul.f32 %v2968_v30, %v1782_v28  ;;  %v2992_v10 = vpop.eup %2991 }
 0x3a5   : > { %v2994_v36 = vpop.eup %2993 }
 0x3a6   : > { %v1786_v34 = vpop.f32.mrb[42].mxu1  ;;  %1971 = vmatprep.mubr.f32.mxu0 %v1876_v35  ;;  %v2996_v60 = vpop.eup %2995 }
 0x3a7   : > { %v1877_v38 = vmul.f32 %v2970_v33, %v1786_v34  ;;  %v1788_v41 = vpop.f32.mrb[43].mxu1  ;;  %1972 = vmatmul.mubr.f32.vlgmr.msra.gmra.mrb[56].mxu0 %v1875_v31  ;;  %v2998_v42 = vpop.eup %2997 }
 0x3a8   : > { %v1878_v39 = vmul.f32 %v2972_v37, %v1788_v41  ;;  %v3000_v2 = vpop.eup %2999 }
 0x3aa   : > { %v1792_v45 = vpop.f32.mrb[44].mxu1  ;;  %1976 = vmatprep.mubr.f32.mxu0 %v1878_v39 }
 0x3ab   : > { %v1879_v49 = vmul.f32 %v2974_v43, %v1792_v45  ;;  %v1794_v46 = vpop.f32.mrb[45].mxu1  ;;  %1977 = vmatmul.mubr.f32.gmra.mrb[58].mxu0 %v1877_v38  ;;  %v1593_v38 = vadd.f32 %v4066_v5, %v4071_v15  ;;  %v1599_v45 = vadd.f32 %v4076_v13, %v4071_v15  ;;  %v1601_v5 = vadd.f32 %v4078_v14, %v4074_v16 }
 0x3ac   : > { %v1880_v51 = vmul.f32 %v2976_v48, %v1794_v46  ;;  %v1607_v13 = vadd.f32 %v4084_v7, %v4074_v16 }
 0x3ad   : > { %3009 = vtanh.f32 %v1593_v38 }
 0x3ae   : > { %v1798_v56 = vpop.f32.mrb[46].mxu1  ;;  %1981 = vmatprep.mubr.f32.mxu0 %v1880_v51  ;;  %3011 = vtanh.f32 %v1595_v1 }
 0x3af   : > { %v1881_v63 = vmul.f32 %v2978_v55, %v1798_v56  ;;  %v1800_v0 = vpop.f32.mrb[47].mxu1  ;;  %1982 = vmatmul.mubr.f32.gmra.mrb[60].mxu0 %v1879_v49  ;;  %v3002_v49 = vpop.eup %3001  ;;  %3013 = vtanh.f32 %v1599_v45 }
 0x3b0   : > { %v1882_v61 = vmul.f32 %v2980_v53, %v1800_v0  ;;  %v3004_v19 = vpop.eup %3003  ;;  %3015 = vtanh.f32 %v1601_v5 }
 0x3b1   : > { %v3006_v56 = vpop.eup %3005  ;;  %3017 = vtanh.f32 %v1605_v52 }
 0x3b2   : > { %v1804_v58 = vpop.f32.mrb[48].mxu1  ;;  %1986 = vmatprep.mubr.f32.mxu0 %v1882_v61  ;;  %v3008_v14 = vpop.eup %3007  ;;  %3019 = vtanh.f32 %v1607_v13 }
 0x3b3   : > { %v1883_v29 = vmul.f32 %v2982_v57, %v1804_v58  ;;  %v1806_v17 = vpop.f32.mrb[49].mxu1  ;;  %1987 = vmatmul.mubr.f32.gmra.mrb[62].mxu0 %v1881_v63  ;;  %3021 = vtanh.f32 %v1611_v54 }
 0x3b4   : > { %v1884_v21 = vmul.f32 %v2984_v59, %v1806_v17  ;;  %3023 = vtanh.f32 %v1613_v22 }
 0x3b6   : > { %v1810_v23 = vpop.f32.mrb[50].mxu1  ;;  %1991 = vmatprep.mubr.f32.mxu0 %v1884_v21 }
 0x3b7   : > { %v1885_v24 = vmul.f32 %v2986_v44, %v1810_v23  ;;  %v1812_v25 = vpop.f32.mrb[51].mxu1  ;;  %1992 = vmatmul.mubr.f32.gmra.mrb[64].mxu0 %v1883_v29  ;;  %v3010_v62 = vpop.eup %3009  ;;  %v1617_v29 = vadd.f32 %v4094_v3, %v4071_v15 }
 0x3b8   : > { %v1886_v20 = vmul.f32 %v2988_v6, %v1812_v25  ;;  %v3012_v7 = vpop.eup %3011 }
 0x3b9   : > { %v3014_v18 = vpop.eup %3013  ;;  %3025 = vtanh.f32 %v1617_v29 }
 0x3ba   : > { %v1816_v30 = vpop.f32.mrb[52].mxu1  ;;  %1996 = vmatprep.mubr.f32.mxu0 %v1886_v20  ;;  %v3016_v9 = vpop.eup %3015  ;;  %3027 = vtanh.f32 %v1619_v50 }
 0x3bb   : > { %v1887_v31 = vmul.f32 %v2990_v27, %v1816_v30  ;;  %v1818_v28 = vpop.f32.mrb[53].mxu1  ;;  %1997 = vmatmul.mubr.f32.gmra.mrb[66].mxu0 %v1885_v24  ;;  %v3018_v6 = vpop.eup %3017 }
 0x3bc   : > { %v1888_v35 = vmul.f32 %v2992_v10, %v1818_v28  ;;  %v3020_v25 = vpop.eup %3019 }
 0x3bd   : > { %v3022_v20 = vpop.eup %3021 }
 0x3be   : > { %v1822_v33 = vpop.f32.mrb[54].mxu1  ;;  %2001 = vmatprep.mubr.f32.mxu0 %v1888_v35  ;;  %v3024_v8 = vpop.eup %3023 }
 0x3bf   : > { %v1889_v34 = vmul.f32 %v2994_v36, %v1822_v33  ;;  %v1824_v37 = vpop.f32.mrb[55].mxu1  ;;  %2002 = vmatmul.mubr.f32.gmra.mrb[68].mxu0 %v1887_v31 }
 0x3c0   : > { %v1890_v41 = vmul.f32 %v2996_v60, %v1824_v37 }
 0x3c2   : > { %v1828_v39 = vpop.f32.mrb[56].mxu1  ;;  %2006 = vmatprep.mubr.f32.mxu0 %v1890_v41 }
 0x3c3   : > { %v1891_v40 = vmul.f32 %v2998_v42, %v1828_v39  ;;  %v1830_v43 = vpop.f32.mrb[57].mxu1  ;;  %2007 = vmatmul.mubr.f32.gmra.mrb[70].mxu0 %v1889_v34  ;;  %v3026_v10 = vpop.eup %3025 }
 0x3c4   : > { %v1892_v48 = vmul.f32 %v3000_v2, %v1830_v43  ;;  %v3028_v28 = vpop.eup %3027 }
 0x3c6   : > { %v1834_v46 = vpop.f32.mrb[58].mxu1  ;;  %2011 = vmatprep.mubr.f32.mxu0 %v1892_v48 }
 0x3c7   : > { %v1893_v47 = vmul.f32 %v3002_v49, %v1834_v46  ;;  %v1836_v51 = vpop.f32.mrb[59].mxu1  ;;  %2012 = vmatmul.mubr.f32.gmra.mrb[72].mxu0 %v1891_v40 }
 0x3c8   : > { %v1894_v55 = vmul.f32 %v3004_v19, %v1836_v51 }
 0x3ca   : > { %v1840_v53 = vpop.f32.mrb[60].mxu1  ;;  %2016 = vmatprep.mubr.f32.mxu0 %v1894_v55 }
 0x3cb   : > { %v1895_v63 = vmul.f32 %v3006_v56, %v1840_v53  ;;  %v1842_v0 = vpop.f32.mrb[61].mxu1  ;;  %2017 = vmatmul.mubr.f32.gmra.mrb[74].mxu0 %v1893_v47 }
 0x3cc   : > { %v1896_v61 = vmul.f32 %v3008_v14, %v1842_v0 }
 0x3ce   : > { %v1846_v57 = vpop.f32.mrb[62].mxu1  ;;  %2021 = vmatprep.mubr.f32.mxu0 %v1896_v61 }
 0x3cf   : > { %v1897_v58 = vmul.f32 %v3010_v62, %v1846_v57  ;;  %v1848_v59 = vpop.f32.mrb[63].mxu1  ;;  %2022 = vmatmul.mubr.f32.gmra.mrb[76].mxu0 %v1895_v63 }
 0x3d0   : > { %v1898_v17 = vmul.f32 %v3012_v7, %v1848_v59 }
 0x3d2   : > { %v1852_v21 = vpop.f32.mrb[64].mxu1  ;;  %2026 = vmatprep.mubr.f32.mxu0 %v1898_v17 }
 0x3d3   : > { %v1899_v11 = vmul.f32 %v3014_v18, %v1852_v21  ;;  %v1854_v44 = vpop.f32.mrb[65].mxu1  ;;  %2027 = vmatmul.mubr.f32.gmra.mrb[78].mxu0 %v1897_v58 }
 0x3d4   : > { %v1900_v23 = vmul.f32 %v3016_v9, %v1854_v44 }
 0x3d6   : > { %v1858_v24 = vpop.f32.mrb[66].mxu1  ;;  %2031 = vmatprep.mubr.f32.mxu0 %v1900_v23 }
 0x3d7   : > { %v1901_v15 = vmul.f32 %v3018_v6, %v1858_v24  ;;  %v1860_v3 = vpop.f32.mrb[67].mxu1  ;;  %2032 = vmatmul.mubr.f32.gmra.mrb[80].mxu0 %v1899_v11 }
 0x3d8   : > { %v1902_v26 = vmul.f32 %v3020_v25, %v1860_v3 }
 0x3da   : > { %v1864_v16 = vpop.f32.mrb[68].mxu1  ;;  %2036 = vmatprep.mubr.f32.mxu0 %v1902_v26 }
 0x3db   : > { %v1903_v4 = vmul.f32 %v3022_v20, %v1864_v16  ;;  %v1866_v27 = vpop.f32.mrb[69].mxu1  ;;  %2037 = vmatmul.mubr.f32.gmra.mrb[82].mxu0 %v1901_v15 }
 0x3dc   : > { %v1904_v30 = vmul.f32 %v3024_v8, %v1866_v27 }
 0x3de   : > { %v1870_v31 = vpop.f32.mrb[70].mxu1  ;;  %2041 = vmatprep.mubr.f32.mxu0 %v1904_v30 }
 0x3df   : > { %v1905_v32 = vmul.f32 %v3026_v10, %v1870_v31  ;;  %v1872_v35 = vpop.f32.mrb[71].mxu1  ;;  %2042 = vmatmul.mubr.f32.gmra.mrb[84].mxu0 %v1903_v4 }
 0x3e0   : > { %v1906_v12 = vmul.f32 %v3028_v28, %v1872_v35 }
 0x3e2   : > { %2046 = vmatprep.mubr.f32.mxu0 %v1906_v12  ;;  %v2457_v36 = vpop.f32.mrb[72].mxu1 }
 0x3e3   : > { %2047 = vmatmul.mubr.f32.gmra.mrb[86].mxu0 %v1905_v32  ;;  %v2118_v33 = vpop.f32.mrb[73].mxu1 }
 0x3e6   : > { %v2460_v60 = vpop.f32.mrb[74].mxu1 }
 0x3e7   : > { %v2128_v34 = vpop.f32.mrb[75].mxu1 }
 0x3ea   : > { %v2463_v37 = vpop.f32.mrb[76].mxu1 }
 0x3eb   : > { %v2138_v38 = vpop.f32.mrb[77].mxu1 }
 0x3ee   : > { %v2466_v41 = vpop.f32.mrb[78].mxu1 }
 0x3ef   : > { %v2148_v1 = vpop.f32.mrb[79].mxu1 }
 0x3f2   : > { %v2469_v42 = vpop.f32.mrb[80].mxu1 }
 0x3f3   : > { %v2158_v39 = vpop.f32.mrb[81].mxu1 }
 0x3f6   : > { %v4144_v2 = vpop.f32.mrb[82].mxu1 }
 0x3f7   : > { %v2168_v40 = vpop.f32.mrb[83].mxu1 }
 0x3fa   : > { %v4146_v43 = vpop.f32.mrb[84].mxu1 }
 0x3fb   : > { %v4148_v45 = vpop.f32.mrb[85].mxu1 }
 0x3fe   : > { %v4150_v48 = vpop.f32.mrb[86].mxu1 }
 0x3ff   : > { %v4152_v5 = vpop.f32.mrb[87].mxu1 }
 0x47a   : > { %v2373_v49 = vpop.f32.mrb[56].mxu0 }
 0x47b   : > { %v2374_v46 = vpop.f32.mrb[57].mxu0 }
 0x47c   : > { %v2375_v19 = vadd.f32 %v2374_v46, %v2373_v49 }
 0x47e   : > { %v2119_v47 = vadd.f32 %v2375_v19, %v2118_v33  ;;  %v2376_v51 = vpop.f32.mrb[58].mxu0 }
 0x47f   : > { %v2377_v52 = vpop.f32.mrb[59].mxu0 }
 0x480   : > { %2198 = vst.msk [vmem:[%s4158_s20] sm:$0xff] %vm2197_vm1, %v2119_v47  ;;  %v2378_v55 = vadd.f32 %v2377_v52, %v2376_v51 }
 0x482   : > { %v2124_v13 = vadd.f32 %v2457_v36, %v2378_v55  ;;  %v2379_v56 = vpop.f32.mrb[60].mxu0 }
 0x483   : > { %v2380_v53 = vpop.f32.mrb[61].mxu0 }
 0x484   : > { %2199 = vst.msk [vmem:[%s4158_s20 + $0x8] sm:$0xff] %vm2197_vm1, %v2124_v13  ;;  %v2381_v14 = vadd.f32 %v2380_v53, %v2379_v56 }
 0x486   : > { %v2129_v63 = vadd.f32 %v2381_v14, %v2128_v34  ;;  %v2382_v0 = vpop.f32.mrb[62].mxu0 }
 0x487   : > { %v2383_v54 = vpop.f32.mrb[63].mxu0 }
 0x488   : > { %2200 = vst.msk [vmem:[%s4158_s20 + $0x10] sm:$0xff] %vm2197_vm1, %v2129_v63  ;;  %v2384_v61 = vadd.f32 %v2383_v54, %v2382_v0 }
 0x48a   : > { %v2134_v22 = vadd.f32 %v2460_v60, %v2384_v61  ;;  %v2385_v62 = vpop.f32.mrb[64].mxu0 }
 0x48b   : > { %v2386_v57 = vpop.f32.mrb[65].mxu0 }
 0x48c   : > { %2201 = vst.msk [vmem:[%s4158_s20 + $0x18] sm:$0xff] %vm2197_vm1, %v2134_v22  ;;  %v2387_v7 = vadd.f32 %v2386_v57, %v2385_v62 }
 0x48e   : > { %v2139_v58 = vadd.f32 %v2387_v7, %v2138_v38  ;;  %v2388_v59 = vpop.f32.mrb[66].mxu0 }
 0x48f   : > { %v2389_v29 = vpop.f32.mrb[67].mxu0 }
 0x490   : > { %2202 = vst.msk [vmem:[%s4158_s20 + $0x20] sm:$0xff] %vm2197_vm1, %v2139_v58  ;;  %v2390_v17 = vadd.f32 %v2389_v29, %v2388_v59 }
 0x492   : > { %v2144_v50 = vadd.f32 %v2463_v37, %v2390_v17  ;;  %v2391_v18 = vpop.f32.mrb[68].mxu0 }
 0x493   : > { %v2392_v21 = vpop.f32.mrb[69].mxu0 }
 0x494   : > { %2203 = vst.msk [vmem:[%s4158_s20 + $0x28] sm:$0xff] %vm2197_vm1, %v2144_v50  ;;  %v2393_v9 = vadd.f32 %v2392_v21, %v2391_v18 }
 0x496   : > { %v2149_v11 = vadd.f32 %v2393_v9, %v2148_v1  ;;  %v2394_v44 = vpop.f32.mrb[70].mxu0 }
 0x497   : > { %v2395_v23 = vpop.f32.mrb[71].mxu0 }
 0x498   : > { %2204 = vst.msk [vmem:[%s4158_s20 + $0x30] sm:$0xff] %vm2197_vm1, %v2149_v11  ;;  %v2396_v6 = vadd.f32 %v2395_v23, %v2394_v44 }
 0x49a   : > { %v2154_v24 = vadd.f32 %v2466_v41, %v2396_v6  ;;  %v2397_v25 = vpop.f32.mrb[72].mxu0 }
 0x49b   : > { %v2398_v15 = vpop.f32.mrb[73].mxu0 }
 0x49c   : > { %2205 = vst.msk [vmem:[%s4158_s20 + $0x38] sm:$0xff] %vm2197_vm1, %v2154_v24  ;;  %v2399_v3 = vadd.f32 %v2398_v15, %v2397_v25 }
 0x49e   : > { %v2159_v26 = vadd.f32 %v2399_v3, %v2158_v39  ;;  %v2400_v20 = vpop.f32.mrb[74].mxu0 }
 0x49f   : > { %v2401_v16 = vpop.f32.mrb[75].mxu0 }
 0x4a0   : > { %2206 = vst.msk [vmem:[%s4158_s20 + $0x40] sm:$0xff] %vm2197_vm1, %v2159_v26  ;;  %v2402_v8 = vadd.f32 %v2401_v16, %v2400_v20 }
 0x4a2   : > { %v2164_v4 = vadd.f32 %v2469_v42, %v2402_v8  ;;  %v2403_v27 = vpop.f32.mrb[76].mxu0 }
 0x4a3   : > { %v2404_v30 = vpop.f32.mrb[77].mxu0 }
 0x4a4   : > { %2207 = vst.msk [vmem:[%s4158_s20 + $0x48] sm:$0xff] %vm2197_vm1, %v2164_v4  ;;  %v2405_v10 = vadd.f32 %v2404_v30, %v2403_v27 }
 0x4a6   : > { %v2169_v31 = vadd.f32 %v2405_v10, %v2168_v40  ;;  %v2406_v28 = vpop.f32.mrb[78].mxu0 }
 0x4a7   : > { %v2407_v32 = vpop.f32.mrb[79].mxu0 }
 0x4a8   : > { %2208 = vst.msk [vmem:[%s4158_s20 + $0x50] sm:$0xff] %vm2197_vm1, %v2169_v31  ;;  %v2408_v35 = vadd.f32 %v2407_v32, %v2406_v28 }
 0x4aa   : > { %v2174_v12 = vadd.f32 %v4144_v2, %v2408_v35  ;;  %v2409_v36 = vpop.f32.mrb[80].mxu0 }
 0x4ab   : > { %v2410_v33 = vpop.f32.mrb[81].mxu0 }
 0x4ac   : > { %2209 = vst.msk [vmem:[%s4158_s20 + $0x58] sm:$0xff] %vm2197_vm1, %v2174_v12  ;;  %v2411_v60 = vadd.f32 %v2410_v33, %v2409_v36 }
 0x4ae   : > { %v2179_v34 = vadd.f32 %v2411_v60, %v4148_v45  ;;  %v2412_v37 = vpop.f32.mrb[82].mxu0 }
 0x4af   : > { %v2413_v38 = vpop.f32.mrb[83].mxu0 }
 0x4b0   : > { %2210 = vst.msk [vmem:[%s4158_s20 + $0x60] sm:$0xff] %vm2197_vm1, %v2179_v34  ;;  %v2414_v41 = vadd.f32 %v2413_v38, %v2412_v37 }
 0x4b2   : > { %v2184_v1 = vadd.f32 %v4146_v43, %v2414_v41  ;;  %v2415_v42 = vpop.f32.mrb[84].mxu0 }
 0x4b3   : > { %v2416_v39 = vpop.f32.mrb[85].mxu0 }
 0x4b4   : > { %2211 = vst.msk [vmem:[%s4158_s20 + $0x68] sm:$0xff] %vm2197_vm1, %v2184_v1  ;;  %v2417_v2 = vadd.f32 %v2416_v39, %v2415_v42 }
 0x4b6   : > { %v2189_v40 = vadd.f32 %v2417_v2, %v4152_v5  ;;  %v2418_v49 = vpop.f32.mrb[86].mxu0 }
 0x4b7   : > { %v2419_v46 = vpop.f32.mrb[87].mxu0 }
 0x4b8   : > { %2212 = vst.msk [vmem:[%s4158_s20 + $0x70] sm:$0xff] %vm2197_vm1, %v2189_v40  ;;  %v2420_v45 = vadd.f32 %v2419_v46, %v2418_v49 }
 0x4ba   : > { %v2194_v19 = vadd.f32 %v4150_v48, %v2420_v45 }
 0x4bc   : > { %2213 = vst.msk [vmem:[%s4158_s20 + $0x78] sm:$0xff] %vm2197_vm1, %v2194_v19 }
 0x4bd PF: > { %s23_s21 = sadd.s32 1, %s3067_s21  }
 0x4be   : > { %p20_p3 = scmp.ge.s32.totalorder %s23_s21, 6  }
 0x4c0   :  { %22 = sbr.rel (!%p20_p3) target bundleno = 1 (0x1), region = 106 }
 0x4c7   :  { %2236 = vsyncpa [#allocation3], 1 }
 0x4c8   :  { %2238 = vsyncpa [#allocation3 + $0x1], 1 }

</bundles_post_ra>
